<compile_context>
chip_gen: v7x
topology: tpu7x:2x2x1
jax: 0.10.0
libtpu: 0.0.40
codegen_flags: <defaults>
</compile_context>

<pallas_src>
import jax
import jax.numpy as jnp
from jax import lax
from jax.experimental import pallas as pl
from jax.experimental.pallas import tpu as pltpu

FEATURE_DIM = 768
HIDDEN_DIM = 32
OUT_DIM = 1
TILE_B_MAX = 2048  # 2048 * 768 * 4 B = 6 MiB per x buffer, 12 MiB double-buffered


def _round_up(n, m):
    return ((n + m - 1) // m) * m


def _choose_tile_b(batch):
    rows = _round_up(max(batch, 1), 8)
    if rows <= 8:
        return 8
    # At least 2 grid steps so v7x (2 TensorCores/chip) shards the batch axis;
    # harmless on v5e/v6e (single TC), where per-step overhead is ~0.35 us.
    half = _round_up((rows + 1) // 2, 8)
    return min(TILE_B_MAX, half)


def _mil_mlp_kernel(x_ref, w1_ref, b1_ref, w2_ref, b2_ref, o_ref):
    # fc1 on the MXU: (tb, 768) @ (768, 32) + (1, 32), f32 accumulation.
    h = jnp.dot(x_ref[...], w1_ref[...],
                preferred_element_type=jnp.float32,
                precision=lax.Precision.HIGHEST)
    h = jnp.maximum(h + b1_ref[...], 0.0)
    # TODO(synk): nn.Dropout(0.6) is identity in eval mode; a training-mode kernel
    # would need pltpu.prng_seed / pltpu.prng_random_bits masking.
    # fc3 as (1, 32) . (tb, 32)^T -> (1, tb): lane-dense result row so the output
    # store is an unmasked dense vst and the writeback DMA is contiguous.
    z = lax.dot_general(
        w2_ref[...], h,
        dimension_numbers=(((1,), (1,)), ((), ())),
        preferred_element_type=jnp.float32,
        precision=lax.Precision.HIGHEST,
    ) + b2_ref[...]
    # sigmoid (exp(-z) overflow saturates to the correct 0/1 limits in f32).
    o_ref[...] = (1.0 / (1.0 + jnp.exp(-z))).reshape(o_ref.shape).astype(o_ref.dtype)


def anomaly_detection_forward(x, w1, b1, w2, b2, *, tile_b=None):
    """x: (B, 768) f32 -> (B, 1) f32, matching AnomalyDetectionModel.forward (eval).

    w1: (768, 32), b1: (1, 32), w2: (32, 1), b2: (1, 1).
    """
    B = x.shape[0]
    if tile_b is None:
        tb = _choose_tile_b(B)
    else:
        tb = max(8, _round_up(min(tile_b, TILE_B_MAX), 8))
    num_tiles = pl.cdiv(B, tb)

    # (32, 1) -> (1, 32) row so fc3 produces a lane-dense (1, tb) result.
    w2_row = w2.reshape(1, HIDDEN_DIM)

    weight_bytes = (FEATURE_DIM * HIDDEN_DIM + 2 * HIDDEN_DIM + OUT_DIM) * 4
    cost = pl.CostEstimate(
        flops=2 * B * FEATURE_DIM * HIDDEN_DIM + 2 * B * HIDDEN_DIM,
        transcendentals=B,
        bytes_accessed=B * FEATURE_DIM * 4 + B * OUT_DIM * 4 + weight_bytes,
    )

    out = pl.pallas_call(
        _mil_mlp_kernel,
        out_shape=jax.ShapeDtypeStruct((num_tiles, 1, tb), jnp.float32),
        grid=(num_tiles,),
        in_specs=[
            pl.BlockSpec((tb, FEATURE_DIM), lambda i: (i, 0)),          # streamed per tile
            pl.BlockSpec((FEATURE_DIM, HIDDEN_DIM), lambda i: (0, 0)),  # resident
            pl.BlockSpec((1, HIDDEN_DIM), lambda i: (0, 0)),            # resident
            pl.BlockSpec((1, HIDDEN_DIM), lambda i: (0, 0)),            # resident (w2 row)
            pl.BlockSpec((1, OUT_DIM), lambda i: (0, 0)),               # resident
        ],
        out_specs=pl.BlockSpec((1, 1, tb), lambda i: (i, 0, 0)),        # lane-dense row/tile
        compiler_params=pltpu.CompilerParams(
            dimension_semantics=("parallel",),   # v7x: shard batch tiles across 2 TCs
            vmem_limit_bytes=48 * 1024 * 1024,   # 12 MiB x-buffers + weights; safe on 64 MiB v7x
        ),
        cost_estimate=cost,
    )(x, w1, b1, w2_row, b2)

    # (num_tiles, 1, tb) -> (num_tiles*tb, 1); drop the ragged-tail garbage rows.
    return out.reshape(num_tiles * tb, OUT_DIM)[:B]


def _init_params(key):
    # Deterministic synthetic params with PyTorch-Linear-like init scales.
    k1, k2, k3, k4 = jax.random.split(key, 4)
    lim1 = 1.0 / jnp.sqrt(FEATURE_DIM)
    lim2 = 1.0 / jnp.sqrt(HIDDEN_DIM)
    w1 = jax.random.uniform(k1, (FEATURE_DIM, HIDDEN_DIM), jnp.float32, -lim1, lim1)
    b1 = jax.random.uniform(k2, (1, HIDDEN_DIM), jnp.float32, -lim1, lim1)
    w2 = jax.random.uniform(k3, (HIDDEN_DIM, OUT_DIM), jnp.float32, -lim2, lim2)
    b2 = jax.random.uniform(k4, (1, OUT_DIM), jnp.float32, -lim2, lim2)
    return w1, b1, w2, b2


def _reference(x, w1, b1, w2, b2):
    # Pure-JAX reference (eval-mode dropout == identity), full-precision matmuls.
    h = jnp.maximum(jnp.dot(x, w1, precision=lax.Precision.HIGHEST) + b1, 0.0)
    z = jnp.dot(h, w2, precision=lax.Precision.HIGHEST) + b2
    return 1.0 / (1.0 + jnp.exp(-z))


if __name__ == "__main__":
    key = jax.random.PRNGKey(0)
    kx1, kx2, kp = jax.random.split(key, 3)
    w1, b1, w2, b2 = _init_params(kp)

    # Small sublane-aligned batch: single tile, grid=(1,).
    B1 = 8
    x1 = jax.random.normal(kx1, (B1, FEATURE_DIM), jnp.float32)
    out1 = jax.block_until_ready(anomaly_detection_forward(x1, w1, b1, w2, b2))
    ref1 = _reference(x1, w1, b1, w2, b2)
    assert out1.shape == (B1, OUT_DIM)
    assert jnp.allclose(out1, ref1, atol=1e-5, rtol=1e-5)

    # Ragged batch, auto tile (tb=16 -> grid=(2,), partial last input block, no pad).
    B2 = 20
    x2 = jax.random.normal(kx2, (B2, FEATURE_DIM), jnp.float32)
    out2 = jax.block_until_ready(anomaly_detection_forward(x2, w1, b1, w2, b2))
    ref2 = _reference(x2, w1, b1, w2, b2)
    assert out2.shape == (B2, OUT_DIM)
    assert jnp.allclose(out2, ref2, atol=1e-5, rtol=1e-5)

    # Same ragged batch with a forced small tile (grid=(3,)) to exercise the
    # multi-step pipeline + ragged-tail path.
    out3 = jax.block_until_ready(
        anomaly_detection_forward(x2, w1, b1, w2, b2, tile_b=8))
    assert out3.shape == (B2, OUT_DIM)
    assert jnp.allclose(out3, ref2, atol=1e-5, rtol=1e-5)

    print("KERNEL_OK")
</pallas_src>

<mosaic_0001>
module attributes {stable_mosaic.version = 11 : i64} {
  func.func @_mil_mlp_kernel(%arg0: i32, %arg1: memref<8x768xf32, #tpu.memory_space<vmem>>, %arg2: memref<768x32xf32, #tpu.memory_space<vmem>>, %arg3: memref<1x32xf32, #tpu.memory_space<vmem>>, %arg4: memref<1x32xf32, #tpu.memory_space<vmem>>, %arg5: memref<1x1xf32, #tpu.memory_space<vmem>>, %arg6: memref<1x1x8xf32, #tpu.memory_space<vmem>>) attributes {dimension_semantics = [#tpu.dimension_semantics<parallel>], iteration_bounds = array<i64: 1>, scalar_prefetch = 0 : i64, scratch_operands = 0 : i64, tpu.core_type = #tpu.core_type<tc>, window_params = [{transform_indices = @transform_0, window_bounds = array<i64: 8, 768>}, {pipeline_mode = #tpu.pipeline_mode<synchronous>, transform_indices = @transform_1, window_bounds = array<i64: 768, 32>}, {pipeline_mode = #tpu.pipeline_mode<synchronous>, transform_indices = @transform_2, window_bounds = array<i64: 1, 32>}, {pipeline_mode = #tpu.pipeline_mode<synchronous>, transform_indices = @transform_3, window_bounds = array<i64: 1, 32>}, {pipeline_mode = #tpu.pipeline_mode<synchronous>, transform_indices = @transform_4, window_bounds = array<i64: 1, 1>}, {transform_indices = @transform_5, window_bounds = array<i64: 1, 1, 8>}]} {
    %c0 = arith.constant 0 : index
    %c0_0 = arith.constant 0 : index
    %0 = vector.load %arg1[%c0, %c0_0] : memref<8x768xf32, #tpu.memory_space<vmem>>, vector<8x768xf32>
    %c0_1 = arith.constant 0 : index
    %c0_2 = arith.constant 0 : index
    %1 = vector.load %arg2[%c0_1, %c0_2] : memref<768x32xf32, #tpu.memory_space<vmem>>, vector<768x32xf32>
    %cst = arith.constant dense<0.000000e+00> : vector<8x32xf32>
    %2 = tpu.matmul %0, %1, %cst {dimension_numbers = #tpu.dot_dimension_numbers<[1], [0], [0], [1], [0, 0, 1, 1], [], []>, precision = #tpu.contract_precision<fp32>} : vector<8x768xf32>, vector<768x32xf32>, vector<8x32xf32> -> vector<8x32xf32>
    %c0_3 = arith.constant 0 : index
    %c0_4 = arith.constant 0 : index
    %3 = vector.load %arg3[%c0_3, %c0_4] : memref<1x32xf32, #tpu.memory_space<vmem>>, vector<1x32xf32>
    %4 = vector.broadcast %3 : vector<1x32xf32> to vector<8x32xf32>
    %5 = arith.addf %2, %4 : vector<8x32xf32>
    %cst_5 = arith.constant 0.000000e+00 : f32
    %6 = vector.broadcast %cst_5 : f32 to vector<8x32xf32>
    %7 = arith.maximumf %5, %6 : vector<8x32xf32>
    %c0_6 = arith.constant 0 : index
    %c0_7 = arith.constant 0 : index
    %8 = vector.load %arg4[%c0_6, %c0_7] : memref<1x32xf32, #tpu.memory_space<vmem>>, vector<1x32xf32>
    %cst_8 = arith.constant dense<0.000000e+00> : vector<1x8xf32>
    %9 = tpu.matmul %8, %7, %cst_8 {dimension_numbers = #tpu.dot_dimension_numbers<[1], [1], [0], [0], [0, 0, 1, 0], [], []>, precision = #tpu.contract_precision<fp32>} : vector<1x32xf32>, vector<8x32xf32>, vector<1x8xf32> -> vector<1x8xf32>
    %c0_9 = arith.constant 0 : index
    %c0_10 = arith.constant 0 : index
    %10 = vector.load %arg5[%c0_9, %c0_10] : memref<1x1xf32, #tpu.memory_space<vmem>>, vector<1x1xf32>
    %11 = vector.broadcast %10 : vector<1x1xf32> to vector<1x8xf32>
    %12 = arith.addf %9, %11 : vector<1x8xf32>
    %cst_11 = arith.constant 0.000000e+00 : f32
    %13 = vector.broadcast %cst_11 : f32 to vector<1x8xf32>
    %14 = arith.subf %13, %12 : vector<1x8xf32>
    %15 = math.exp %14 : vector<1x8xf32>
    %cst_12 = arith.constant 1.000000e+00 : f32
    %16 = vector.broadcast %cst_12 : f32 to vector<1x8xf32>
    %17 = arith.addf %16, %15 : vector<1x8xf32>
    %cst_13 = arith.constant 1.000000e+00 : f32
    %18 = vector.broadcast %cst_13 : f32 to vector<1x8xf32>
    %19 = arith.divf %18, %17 : vector<1x8xf32>
    %20 = vector.shape_cast %19 : vector<1x8xf32> to vector<1x1x8xf32>
    %c0_14 = arith.constant 0 : index
    %c0_15 = arith.constant 0 : index
    %c0_16 = arith.constant 0 : index
    %21 = vector.load %arg6[%c0_14, %c0_15, %c0_16] : memref<1x1x8xf32, #tpu.memory_space<vmem>>, vector<1x1x8xf32>
    tpu.vector_store %arg6[%c0_14, %c0_15, %c0_16], %20 {strides = array<i32>} : memref<1x1x8xf32, #tpu.memory_space<vmem>>, vector<1x1x8xf32>,
    return
  }
  func.func @transform_0(%arg0: i32) -> (i32, i32) {
    %c0_i32 = arith.constant 0 : i32
    %c0_i32_0 = arith.constant 0 : i32
    return %arg0, %c0_i32 : i32, i32
  }
  func.func @transform_1(%arg0: i32) -> (i32, i32) {
    %c0_i32 = arith.constant 0 : i32
    %c0_i32_0 = arith.constant 0 : i32
    %c0_i32_1 = arith.constant 0 : i32
    return %c0_i32, %c0_i32_0 : i32, i32
  }
  func.func @transform_2(%arg0: i32) -> (i32, i32) {
    %c0_i32 = arith.constant 0 : i32
    %c0_i32_0 = arith.constant 0 : i32
    %c0_i32_1 = arith.constant 0 : i32
    return %c0_i32, %c0_i32_0 : i32, i32
  }
  func.func @transform_3(%arg0: i32) -> (i32, i32) {
    %c0_i32 = arith.constant 0 : i32
    %c0_i32_0 = arith.constant 0 : i32
    %c0_i32_1 = arith.constant 0 : i32
    return %c0_i32, %c0_i32_0 : i32, i32
  }
  func.func @transform_4(%arg0: i32) -> (i32, i32) {
    %c0_i32 = arith.constant 0 : i32
    %c0_i32_0 = arith.constant 0 : i32
    %c0_i32_1 = arith.constant 0 : i32
    return %c0_i32, %c0_i32_0 : i32, i32
  }
  func.func @transform_5(%arg0: i32) -> (i32, i32, i32) {
    %c0_i32 = arith.constant 0 : i32
    %c0_i32_0 = arith.constant 0 : i32
    %c0_i32_1 = arith.constant 0 : i32
    return %arg0, %c0_i32, %c0_i32_0 : i32, i32, i32
  }
}

</mosaic_0001>

<bundles_post_ra>
// kernel: tpu_custom_call.1
= control target key start
LH: loop header
LB: loop body
LE: loop exit
PB: predicated region body
PF: predicated region fallthrough
CT: control target
= control target key end

     0   :  { %s6200_s0 = inlined_call_operand.vmem [shape: f32[8,768], index: 0, kind: input, shape index: {}]   ;;  %s6201_s1 = inlined_call_operand.vmem [shape: f32[768,32], index: 1, kind: input, shape index: {}]   ;;  %s6202_s2 = inlined_call_operand.vmem [shape: f32[1,32], index: 2, kind: input, shape index: {}]   ;;  %s6203_s3 = inlined_call_operand.vmem [shape: f32[1,32], index: 3, kind: input, shape index: {}]   ;;  %s6204_s4 = inlined_call_operand.<no memory space> [shape: f32[1,1], index: 4, kind: input, shape index: {}]   ;;  %s6205_s5 = inlined_call_operand.hbm [shape: f32[1,1,8], index: 5, kind: output, shape index: {}]  }
   0x1   :  { %v10_v0 = vstv %s6204_s4 }
   0x2   :  { %11 = vst [vmem:[#allocation2] sm:$0x1] %v10_v0 }
   0x3   :  { %v45_v1 = vld [vmem:[%s6201_s1 + $0x80] sm:$0xff]  ;;  %v46_v2 = vld [vmem:[%s6201_s1 + $0x88] sm:$0xff]  ;;  %v47_v8 = vld [vmem:[%s6201_s1 + $0x90] sm:$0xff] }
   0x4   :  { %v29_v3 = vld [vmem:[%s6201_s1] sm:$0xff]  ;;  %v181_v4 = vand.u32 4294901760, %v45_v1  ;;  %v184_v5 = vand.u32 4294901760, %v46_v2  ;;  %v30_v6 = vld [vmem:[%s6201_s1 + $0x8] sm:$0xff]  ;;  %v48_v9 = vld [vmem:[%s6201_s1 + $0x98] sm:$0xff]  ;;  %v187_v11 = vand.u32 4294901760, %v47_v8 }
   0x5   :  { %v133_v7 = vand.u32 4294901760, %v29_v3  ;;  %v136_v10 = vand.u32 4294901760, %v30_v6  ;;  %v190_v12 = vand.u32 4294901760, %v48_v9  ;;  %v31_v13 = vld [vmem:[%s6201_s1 + $0x10] sm:$0xff]  ;;  %v32_v14 = vld [vmem:[%s6201_s1 + $0x18] sm:$0xff]  ;;  %v49_v19 = vld [vmem:[%s6201_s1 + $0xa0] sm:$0xff] }
   0x6   :  { %v4558_v15 = vpack.c.bf16 %v184_v5, %v181_v4  ;;  %v139_v17 = vand.u32 4294901760, %v31_v13  ;;  %v142_v18 = vand.u32 4294901760, %v32_v14  ;;  %v50_v20 = vld [vmem:[%s6201_s1 + $0xa8] sm:$0xff]  ;;  %v33_v24 = vld [vmem:[%s6201_s1 + $0x20] sm:$0xff]  ;;  %v4581_v26 = vsub.f32 %v47_v8, %v187_v11  ;;  %v51_v38 = vld [vmem:[%s6201_s1 + $0xb0] sm:$0xff] }
   0x7   :  { %v4560_v16 = vsub.f32 %v29_v3, %v133_v7  ;;  %v4568_v21 = vpack.c.bf16 %v136_v10, %v133_v7  ;;  %v4570_v22 = vsub.f32 %v30_v6, %v136_v10  ;;  %v4572_v23 = vpack.c.bf16 %v190_v12, %v187_v11  ;;  %v34_v25 = vld [vmem:[%s6201_s1 + $0x28] sm:$0xff]  ;;  %v52_v43 = vld [vmem:[%s6201_s1 + $0xb8] sm:$0xff]  ;;  %v35_v56 = vld [vmem:[%s6201_s1 + $0x30] sm:$0xff] }
   0x8   :  { %3879 = vmatprep.subr.bf16.mxu0 %v4558_v15  ;;  %v4583_v27 = vsub.f32 %v48_v9, %v190_v12  ;;  %v4585_v28 = vpack.c.bf16 %v142_v18, %v139_v17  ;;  %v4587_v29 = vsub.f32 %v31_v13, %v139_v17  ;;  %v193_v30 = vand.u32 4294901760, %v49_v19  ;;  %v36_v57 = vld [vmem:[%s6201_s1 + $0x38] sm:$0xff]  ;;  %v53_v6 = vld [vmem:[%s6201_s1 + $0xc0] sm:$0xff]  ;;  %v54_v7 = vld [vmem:[%s6201_s1 + $0xc8] sm:$0xff] }
   0x9   :  { %3881 = vmatpush3.bf16.msra.mxu0 %v4568_v21  ;;  %v196_v31 = vand.u32 4294901760, %v50_v20  ;;  %v4590_v32 = vsub.f32 %v45_v1, %v181_v4  ;;  %v4592_v33 = vsub.f32 %v46_v2, %v184_v5  ;;  %v145_v34 = vand.u32 4294901760, %v33_v24  ;;  %v37_v12 = vld [vmem:[%s6201_s1 + $0x40] sm:$0xff] }
   0xa   :  { %3883 = vmatprep.subr.bf16.mxu0 %v4572_v23  ;;  %v148_v35 = vand.u32 4294901760, %v34_v25  ;;  %v6222_v36 = vand.u32 4294901760, %v4560_v16  ;;  %v6221_v37 = vand.u32 4294901760, %v4570_v22  ;;  %v4600_v39 = vsub.f32 %v32_v14, %v142_v18 }
   0xb   :  { %v4602_v40 = vpack.c.bf16 %v196_v31, %v193_v30  ;;  %v4604_v41 = vsub.f32 %v49_v19, %v193_v30  ;;  %v6227_v42 = vand.u32 4294901760, %v4590_v32  ;;  %v4610_v44 = vsub.f32 %v50_v20, %v196_v31  ;;  %v38_v30 = vld [vmem:[%s6201_s1 + $0x48] sm:$0xff] }
   0xc   :  { %v6224_v45 = vand.u32 4294901760, %v4592_v33  ;;  %v4613_v46 = vpack.c.bf16 %v148_v35, %v145_v34  ;;  %v4615_v47 = vsub.f32 %v33_v24, %v145_v34  ;;  %v248_v49 = vsub.f32 %v4560_v16, %v6222_v36 }
   0xd   :  { %3885 = vmatpush3.bf16.msra.mxu0 %v4585_v28  ;;  %v360_v48 = vsub.f32 %v4590_v32, %v6227_v42  ;;  %v255_v50 = vsub.f32 %v4570_v22, %v6221_v37  ;;  %v199_v51 = vand.u32 4294901760, %v51_v38  ;;  %v202_v53 = vand.u32 4294901760, %v52_v43 }
   0xe   :  { %3887 = vmatprep.subr.bf16.mxu0 %v4602_v40  ;;  %v367_v52 = vsub.f32 %v4592_v33, %v6224_v45  ;;  %v6219_v54 = vand.u32 4294901760, %v4581_v26  ;;  %v6218_v55 = vand.u32 4294901760, %v4583_v27  ;;  %v4639_v59 = vsub.f32 %v34_v25, %v148_v35 }
   0xf   :  { %v361_v58 = vand.u32 4294901760, %v360_v48  ;;  %v249_v60 = vand.u32 4294901760, %v248_v49  ;;  %v256_v61 = vand.u32 4294901760, %v255_v50  ;;  %v4641_v63 = vpack.c.bf16 %v202_v53, %v199_v51 }
  0x10   :  { %v368_v62 = vand.u32 4294901760, %v367_v52  ;;  %v4643_v0 = vsub.f32 %v51_v38, %v199_v51  ;;  %v374_v1 = vsub.f32 %v4581_v26, %v6219_v54  ;;  %v381_v3 = vsub.f32 %v4583_v27, %v6218_v55 }
  0x11   :  { %3889 = vmatpush3.bf16.msra.mxu0 %v4613_v46  ;;  %v3912_v2 = vpack.c.bf16 %v256_v61, %v249_v60  ;;  %v151_v4 = vand.u32 4294901760, %v35_v56  ;;  %v154_v5 = vand.u32 4294901760, %v36_v57  ;;  %v6217_v10 = vand.u32 4294901760, %v4587_v29 }
  0x12   :  { %v3910_v8 = vpack.c.bf16 %v368_v62, %v361_v58  ;;  %3891 = vmatprep.subr.bf16.mxu0 %v4641_v63  ;;  %v375_v9 = vand.u32 4294901760, %v374_v1  ;;  %v6214_v11 = vand.u32 4294901760, %v4600_v39  ;;  %v4664_v13 = vsub.f32 %v52_v43, %v202_v53  ;;  %v56_v58 = vld [vmem:[%s6201_s1 + $0xd8] sm:$0xff] }
  0x13   :  { %v382_v14 = vand.u32 4294901760, %v381_v3  ;;  %v4666_v17 = vpack.c.bf16 %v154_v5, %v151_v4  ;;  %v4668_v18 = vsub.f32 %v35_v56, %v151_v4  ;;  %v262_v19 = vsub.f32 %v4587_v29, %v6217_v10 }
  0x14   :  { %3911 = vmatprep.subr.bf16.mxu1 %v3910_v8  ;;  %v269_v20 = vsub.f32 %v4600_v39, %v6214_v11  ;;  %v205_v24 = vand.u32 4294901760, %v53_v6  ;;  %v208_v25 = vand.u32 4294901760, %v54_v7  ;;  %v6212_v34 = vand.u32 4294901760, %v4604_v41 }
  0x15   :  { %3913 = vmatpush3.bf16.msra.mxu1 %v3912_v2  ;;  %v3914_v31 = vpack.c.bf16 %v382_v14, %v375_v9  ;;  %3893 = vmatpush3.bf16.msra.mxu0 %v4666_v17  ;;  %v6211_v35 = vand.u32 4294901760, %v4610_v44  ;;  %v157_v38 = vand.u32 4294901760, %v37_v12  ;;  %v4682_v43 = vsub.f32 %v36_v57, %v154_v5  ;;  %v55_v57 = vld [vmem:[%s6201_s1 + $0xd0] sm:$0xff] }
  0x16   :  { %v263_v48 = vand.u32 4294901760, %v262_v19  ;;  %v270_v49 = vand.u32 4294901760, %v269_v20  ;;  %v4684_v50 = vpack.c.bf16 %v208_v25, %v205_v24  ;;  %v4686_v51 = vsub.f32 %v53_v6, %v205_v24  ;;  %v39_v2 = vld [vmem:[%s6201_s1 + $0x50] sm:$0xff]  ;;  %v40_v19 = vld [vmem:[%s6201_s1 + $0x58] sm:$0xff] }
  0x17   :  { %3915 = vmatprep.subr.bf16.mxu1 %v3914_v31  ;;  %v388_v52 = vsub.f32 %v4604_v41, %v6212_v34  ;;  %v395_v53 = vsub.f32 %v4610_v44, %v6211_v35  ;;  %v160_v56 = vand.u32 4294901760, %v38_v30  ;;  %v4701_v61 = vsub.f32 %v54_v7, %v208_v25 }
  0x18   :  { %v3916_v60 = vpack.c.bf16 %v270_v49, %v263_v48  ;;  %3895 = vmatprep.subr.bf16.mxu0 %v4684_v50  ;;  %v6209_v62 = vand.u32 4294901760, %v4615_v47  ;;  %v6208_v1 = vand.u32 4294901760, %v4639_v59  ;;  %v4710_v6 = vsub.f32 %v37_v12, %v157_v38 }
  0x19   :  { %v389_v3 = vand.u32 4294901760, %v388_v52  ;;  %v396_v4 = vand.u32 4294901760, %v395_v53  ;;  %v4708_v5 = vpack.c.bf16 %v160_v56, %v157_v38  ;;  %v211_v9 = vand.u32 4294901760, %v55_v57 }
  0x1a   :  { %3917 = vmatpush3.bf16.msra.mxu1 %v3916_v60  ;;  %v276_v7 = vsub.f32 %v4615_v47, %v6209_v62  ;;  %v283_v8 = vsub.f32 %v4639_v59, %v6208_v1  ;;  %v214_v14 = vand.u32 4294901760, %v56_v58 }
  0x1b   :  { %12 = vsyncpa [#allocation4], 0  ;;  %v3918_v20 = vpack.c.bf16 %v396_v4, %v389_v3  ;;  %3897 = vmatpush3.bf16.msra.mxu0 %v4708_v5  ;;  %v6207_v12 = vand.u32 4294901760, %v4643_v0  ;;  %v6206_v24 = vand.u32 4294901760, %v4664_v13  ;;  %v163_v25 = vand.u32 4294901760, %v39_v2 }
  0x1c   :  { %v4724_v31 = vsub.f32 %v38_v30, %v160_v56  ;;  %v277_v38 = vand.u32 4294901760, %v276_v7  ;;  %v284_v48 = vand.u32 4294901760, %v283_v8  ;;  %v4726_v49 = vpack.c.bf16 %v214_v14, %v211_v9  ;;  %v57_v30 = vld [vmem:[%s6201_s1 + $0xe0] sm:$0xff]  ;;  %v58_v56 = vld [vmem:[%s6201_s1 + $0xe8] sm:$0xff] }
  0x1d   :  { %3919 = vmatprep.subr.bf16.mxu1 %v3918_v20  ;;  %v4728_v52 = vsub.f32 %v55_v57, %v211_v9  ;;  %v402_v53 = vsub.f32 %v4643_v0, %v6207_v12  ;;  %v409_v60 = vsub.f32 %v4664_v13, %v6206_v24  ;;  %v166_v3 = vand.u32 4294901760, %v40_v19  ;;  %v41_v9 = vld [vmem:[%s6201_s1 + $0x60] sm:$0xff] }
  0x1e   :  { %v3920_v4 = vpack.c.bf16 %v284_v48, %v277_v38  ;;  %3899 = vmatprep.subr.bf16.mxu0 %v4726_v49  ;;  %v4743_v57 = vsub.f32 %v56_v58, %v214_v14  ;;  %v6210_v7 = vand.u32 4294901760, %v4668_v18  ;;  %v6213_v8 = vand.u32 4294901760, %v4682_v43 }
  0x1f   :  { %v403_v20 = vand.u32 4294901760, %v402_v53  ;;  %v410_v24 = vand.u32 4294901760, %v409_v60  ;;  %v4750_v12 = vpack.c.bf16 %v166_v3, %v163_v25  ;;  %v4752_v1 = vsub.f32 %v39_v2, %v163_v25  ;;  %v42_v53 = vld [vmem:[%s6201_s1 + $0x68] sm:$0xff] }
  0x20   :  { %3921 = vmatpush3.bf16.msra.mxu1 %v3920_v4  ;;  %v290_v58 = vsub.f32 %v4668_v18, %v6210_v7  ;;  %v297_v14 = vsub.f32 %v4682_v43, %v6213_v8  ;;  %v217_v38 = vand.u32 4294901760, %v57_v30  ;;  %v220_v48 = vand.u32 4294901760, %v58_v56 }
  0x21   :  { %6339 = vst [vmem:[#allocation6_spill] sm:$0xff] %v4750_v12  ;;  %v3922_v60 = vpack.c.bf16 %v410_v24, %v403_v20  ;;  %3901 = vmatpush3.bf16.msra.mxu0 %v4750_v12  ;;  %v6216_v2 = vand.u32 4294901760, %v4686_v51  ;;  %v6215_v25 = vand.u32 4294901760, %v4701_v61  ;;  %v169_v4 = vand.u32 4294901760, %v41_v9 }
  0x22   :  { %v4766_v62 = vsub.f32 %v40_v19, %v166_v3  ;;  %v291_v7 = vand.u32 4294901760, %v290_v58  ;;  %v298_v35 = vand.u32 4294901760, %v297_v14  ;;  %v4768_v34 = vpack.c.bf16 %v220_v48, %v217_v38  ;;  %v59_v19 = vld [vmem:[%s6201_s1 + $0xf0] sm:$0xff]  ;;  %v60_v3 = vld [vmem:[%s6201_s1 + $0xf8] sm:$0xff] }
  0x23   :  { %3923 = vmatprep.subr.bf16.mxu1 %v3922_v60  ;;  %v4770_v8 = vsub.f32 %v57_v30, %v217_v38  ;;  %v416_v24 = vsub.f32 %v4686_v51, %v6216_v2  ;;  %v423_v20 = vsub.f32 %v4701_v61, %v6215_v25  ;;  %v172_v11 = vand.u32 4294901760, %v42_v53  ;;  %v43_v60 = vld [vmem:[%s6201_s1 + $0x70] sm:$0xff] }
  0x24   :  { %6340 = vst [vmem:[#allocation7_spill] sm:$0xff] %v4768_v34  ;;  %v3924_v58 = vpack.c.bf16 %v298_v35, %v291_v7  ;;  %3903 = vmatprep.subr.bf16.mxu0 %v4768_v34  ;;  %v4785_v30 = vsub.f32 %v58_v56, %v220_v48  ;;  %v6220_v14 = vand.u32 4294901760, %v4710_v6  ;;  %v6223_v38 = vand.u32 4294901760, %v4724_v31 }
  0x25   :  { %v417_v25 = vand.u32 4294901760, %v416_v24  ;;  %v424_v2 = vand.u32 4294901760, %v423_v20  ;;  %v4792_v10 = vpack.c.bf16 %v172_v11, %v169_v4  ;;  %v4794_v55 = vsub.f32 %v41_v9, %v169_v4  ;;  %v44_v24 = vld [vmem:[%s6201_s1 + $0x78] sm:$0xff] }
  0x26   :  { %3925 = vmatpush3.bf16.msra.mxu1 %v3924_v58  ;;  %v304_v35 = vsub.f32 %v4710_v6, %v6220_v14  ;;  %v311_v56 = vsub.f32 %v4724_v31, %v6223_v38  ;;  %v223_v7 = vand.u32 4294901760, %v59_v19  ;;  %v226_v48 = vand.u32 4294901760, %v60_v3 }
  0x27   :  { %6341 = vst [vmem:[#allocation8_spill] sm:$0xff] %v4792_v10  ;;  %v3926_v20 = vpack.c.bf16 %v424_v2, %v417_v25  ;;  %3905 = vmatpush3.bf16.msra.mxu0 %v4792_v10  ;;  %v6226_v9 = vand.u32 4294901760, %v4728_v52  ;;  %v6225_v4 = vand.u32 4294901760, %v4743_v57  ;;  %v175_v58 = vand.u32 4294901760, %v43_v60 }
  0x28   :  { %v4808_v54 = vsub.f32 %v42_v53, %v172_v11  ;;  %v305_v14 = vand.u32 4294901760, %v304_v35  ;;  %v312_v37 = vand.u32 4294901760, %v311_v56  ;;  %v4810_v36 = vpack.c.bf16 %v226_v48, %v223_v7  ;;  %v24_v11 = vld [vmem:[%s6200_s0 + $0x8] sm:$0xff] }
  0x29   :  { %3927 = vmatprep.subr.bf16.mxu1 %v3926_v20  ;;  %v4812_v38 = vsub.f32 %v59_v19, %v223_v7  ;;  %v430_v2 = vsub.f32 %v4728_v52, %v6226_v9  ;;  %v437_v25 = vsub.f32 %v4743_v57, %v6225_v4  ;;  %v178_v45 = vand.u32 4294901760, %v44_v24  ;;  %v23_v7 = vld [vmem:[%s6200_s0] sm:$0xff] }
  0x2a   :  { %6342 = vst [vmem:[#allocation9_spill] sm:$0xff] %v4810_v36  ;;  %v3928_v53 = vpack.c.bf16 %v312_v37, %v305_v14  ;;  %3907 = vmatprep.subr.bf16.mxu0 %v4810_v36  ;;  %v4824_v35 = vsub.f32 %v60_v3, %v226_v48  ;;  %v6230_v19 = vand.u32 4294901760, %v4752_v1  ;;  %v6231_v56 = vand.u32 4294901760, %v4766_v62 }
  0x2b   :  { %v431_v20 = vand.u32 4294901760, %v430_v2  ;;  %v438_v4 = vand.u32 4294901760, %v437_v25  ;;  %v4831_v9 = vpack.c.bf16 %v178_v45, %v175_v58  ;;  %v4833_v42 = vsub.f32 %v43_v60, %v175_v58 }
  0x2c   :  { %3929 = vmatpush3.bf16.msra.mxu1 %v3928_v53  ;;  %v318_v37 = vsub.f32 %v4752_v1, %v6230_v19  ;;  %v325_v3 = vsub.f32 %v4766_v62, %v6231_v56  ;;  %v4841_v14 = vand.u32 4294901760, %v24_v11  ;;  %v6234_v48 = vand.u32 4294901760, %v4770_v8 }
  0x2d   :  { %6343 = vst [vmem:[#allocation10_spill] sm:$0xff] %v4831_v9  ;;  %v3930_v36 = vpack.c.bf16 %v438_v4, %v431_v20  ;;  %3909 = vmatpush3.bf16.msra.mxu0 %v4831_v9  ;;  %v6240_v2 = vand.u32 4294901760, %v4785_v30  ;;  %v3942_v60 = vpack.c.bf16 %v4592_v33, %v4590_v32  ;;  %v4848_v58 = vand.u32 4294901760, %v23_v7 }
  0x2e   :  { %6344 = vst [vmem:[#allocation11_spill] sm:$0xff] %v4841_v14  ;;  %v319_v25 = vand.u32 4294901760, %v318_v37  ;;  %v326_v53 = vand.u32 4294901760, %v325_v3  ;;  %v4851_v19 = vsub.f32 %v24_v11, %v4841_v14  ;;  %v444_v56 = vsub.f32 %v4770_v8, %v6234_v48  ;;  %469 = vmatprep.mubr.f32.mxu1 %v4841_v14 }
  0x2f   :  { %3931 = vmatprep.subr.bf16.mxu1 %v3930_v36  ;;  %v451_v4 = vsub.f32 %v4785_v30, %v6240_v2  ;;  %3943 = vmatprep.subr.bf16.mxu0 %v3942_v60  ;;  %v4861_v20 = vsub.f32 %v23_v7, %v4848_v58  ;;  %v6239_v37 = vand.u32 4294901760, %v4794_v55  ;;  %v6241_v11 = vand.u32 4294901760, %v4808_v54 }
  0x30   :  { %v4865_v3 = vsub.f32 %v44_v24, %v178_v45  ;;  %v3932_v9 = vpack.c.bf16 %v326_v53, %v319_v25  ;;  %v6242_v48 = vand.u32 4294901760, %v4851_v19  ;;  %v445_v10 = vand.u32 4294901760, %v444_v56 }
  0x31   :  { %v452_v14 = vand.u32 4294901760, %v451_v4  ;;  %v236_v36 = vand.u32 4294901760, %v4861_v20  ;;  %v332_v60 = vsub.f32 %v4794_v55, %v6239_v37  ;;  %v339_v7 = vsub.f32 %v4808_v54, %v6241_v11 }
  0x32   :  { %3933 = vmatpush3.bf16.msra.mxu1 %v3932_v9  ;;  %v231_v45 = vsub.f32 %v4851_v19, %v6242_v48  ;;  %v3944_v24 = vpack.c.bf16 %v4570_v22, %v4560_v16  ;;  %v6247_v56 = vand.u32 4294901760, %v4812_v38  ;;  %v6250_v25 = vand.u32 4294901760, %v4824_v35 }
  0x33   :  { %v3934_v53 = vpack.c.bf16 %v452_v14, %v445_v10  ;;  %v237_v4 = vsub.f32 %v4861_v20, %v236_v36  ;;  %v333_v37 = vand.u32 4294901760, %v332_v60  ;;  %v340_v2 = vand.u32 4294901760, %v339_v7 }
  0x34   :  { %v232_v11 = vand.u32 4294901760, %v231_v45  ;;  %v458_v9 = vsub.f32 %v4812_v38, %v6247_v56  ;;  %v465_v48 = vsub.f32 %v4824_v35, %v6250_v25  ;;  %v6249_v34 = vand.u32 4294901760, %v4833_v42 }
  0x35   :  { %3935 = vmatprep.subr.bf16.mxu1 %v3934_v53  ;;  %v238_v12 = vand.u32 4294901760, %v237_v4  ;;  %v3936_v10 = vpack.c.bf16 %v340_v2, %v333_v37  ;;  %v3946_v14 = vpack.c.bf16 %v4583_v27, %v4581_v26  ;;  %v6248_v60 = vand.u32 4294901760, %v4865_v3 }
  0x36   :  { %233 = vmatprep.mubr.f32.mxu0 %v232_v11  ;;  %v459_v7 = vand.u32 4294901760, %v458_v9  ;;  %v466_v45 = vand.u32 4294901760, %v465_v48  ;;  %v346_v56 = vsub.f32 %v4833_v42, %v6249_v34  ;;  %v3948_v4 = vpack.c.bf16 %v4600_v39, %v4587_v29 }
  0x37   :  { %239 = vmatmul.mubr.f32.vlgmr.msra.gmra.mrb[0].mxu0 %v238_v12  ;;  %3937 = vmatpush3.bf16.msra.mxu1 %v3936_v10  ;;  %v353_v53 = vsub.f32 %v4865_v3, %v6248_v60  ;;  %v3950_v11 = vpack.c.bf16 %v4610_v44, %v4604_v41  ;;  %v3952_v12 = vpack.c.bf16 %v4639_v59, %v4615_v47  ;;  %v6346_v10 = vand.u32 4294901760, %v4592_v33 }
  0x38   :  { %3945 = vmatpush3.bf16.msra.mxu0 %v3944_v24  ;;  %v3938_v2 = vpack.c.bf16 %v466_v45, %v459_v7  ;;  %v347_v37 = vand.u32 4294901760, %v346_v56  ;;  %606 = vmatprep.mubr.f32.mxu0 %v4851_v19  ;;  %v3954_v9 = vpack.c.bf16 %v4664_v13, %v4643_v0  ;;  %v6345_v56 = vand.u32 4294901760, %v4590_v32 }
  0x39   :  { %3947 = vmatprep.subr.bf16.mxu0 %v3946_v14  ;;  %v354_v48 = vand.u32 4294901760, %v353_v53  ;;  %v6347_v45 = vand.u32 4294901760, %v4560_v16  ;;  %v6348_v14 = vand.u32 4294901760, %v4570_v22  ;;  %v6349_v60 = vand.u32 4294901760, %v4581_v26 }
  0x3a   :  { %3939 = vmatprep.subr.bf16.mxu1 %v3938_v2  ;;  %v4006_v7 = vpack.c.bf16 %v6346_v10, %v6345_v56  ;;  %v6350_v2 = vand.u32 4294901760, %v4583_v27  ;;  %v6351_v25 = vand.u32 4294901760, %v4587_v29  ;;  %v6353_v32 = vand.u32 4294901760, %v4604_v41 }
  0x3b   :  { %v3940_v24 = vpack.c.bf16 %v354_v48, %v347_v37  ;;  %v4008_v53 = vpack.c.bf16 %v6348_v14, %v6347_v45  ;;  %v6352_v37 = vand.u32 4294901760, %v4600_v39  ;;  %v6354_v33 = vand.u32 4294901760, %v4610_v44  ;;  %v6368_v14 = vld [vmem:[#allocation11_spill] sm:$0xff] }
  0x3c   :  { %v4010_v34 = vpack.c.bf16 %v6350_v2, %v6349_v60  ;;  %3949 = vmatpush3.bf16.msra.mxu0 %v3948_v4  ;;  %v6355_v16 = vand.u32 4294901760, %v4615_v47  ;;  %v6356_v22 = vand.u32 4294901760, %v4639_v59  ;;  %v6357_v26 = vand.u32 4294901760, %v4643_v0  ;;  %v78_v2 = vld [vmem:[%s6201_s1 + $0x188] sm:$0xff] }
  0x3d   :  { %v4012_v48 = vpack.c.bf16 %v6352_v37, %v6351_v25  ;;  %v4014_v56 = vpack.c.bf16 %v6354_v33, %v6353_v32  ;;  %v6358_v27 = vand.u32 4294901760, %v4664_v13  ;;  %3941 = vmatpush3.bf16.msra.mxu1 %v3940_v24  ;;  %3951 = vmatprep.subr.bf16.mxu0 %v3950_v11  ;;  %v6359_v29 = vand.u32 4294901760, %v4668_v18  ;;  %v61_v37 = vld [vmem:[%s6201_s1 + $0x100] sm:$0xff]  ;;  %v6369_v32 = vld [vmem:[#allocation8_spill] sm:$0xff] }
  0x3e   :  { %v4934_v10 = vpack.c.bf16 %v6356_v22, %v6355_v16  ;;  %v6360_v39 = vand.u32 4294901760, %v4682_v43  ;;  %v6361_v44 = vand.u32 4294901760, %v4686_v51  ;;  %v6362_v47 = vand.u32 4294901760, %v4701_v61  ;;  %3975 = vmatprep.subr.bf16.mxu1 %v4558_v15  ;;  %v6370_v33 = vld [vmem:[#allocation9_spill] sm:$0xff] }
  0x3f   :  { %v4940_v60 = vpack.c.bf16 %v6358_v27, %v6357_v26  ;;  %v6363_v0 = vand.u32 4294901760, %v4710_v6  ;;  %v6364_v13 = vand.u32 4294901760, %v4724_v31  ;;  %v3956_v4 = vpack.c.bf16 %v4682_v43, %v4668_v18  ;;  %v6371_v27 = vld [vmem:[#allocation10_spill] sm:$0xff] }
  0x40   :  { %v4946_v41 = vpack.c.bf16 %v6360_v39, %v6359_v29  ;;  %v4952_v59 = vpack.c.bf16 %v6362_v47, %v6361_v44  ;;  %471 = vmatmul.mubr.f32.vlgmr.msra.gmra.mrb[0].mxu1 %v4848_v58  ;;  %3953 = vmatpush3.bf16.msra.mxu0 %v3952_v12  ;;  %v3958_v11 = vpack.c.bf16 %v4701_v61, %v4686_v51  ;;  %v6365_v24 = vand.u32 4294901760, %v4851_v19  ;;  %v6366_v19 = vld [vmem:[#allocation6_spill] sm:$0xff]  ;;  %v6367_v12 = vld [vmem:[#allocation7_spill] sm:$0xff]  ;;  %v80_v39 = vld [vmem:[%s6201_s1 + $0x198] sm:$0xff] }
  0x41   :  { %v4958_v25 = vpack.c.bf16 %v6364_v13, %v6363_v0  ;;  %3977 = vmatpush3.bf16.msra.mxu1 %v4568_v21  ;;  %3955 = vmatprep.subr.bf16.mxu0 %v3954_v9  ;;  %v3960_v45 = vpack.c.bf16 %v4724_v31, %v4710_v6  ;;  %v3962_v18 = vpack.c.bf16 %v4743_v57, %v4728_v52  ;;  %v77_v9 = vld [vmem:[%s6201_s1 + $0x180] sm:$0xff]  ;;  %v1046_v16 = vand.u32 4294901760, %v78_v2  ;;  %v79_v29 = vld [vmem:[%s6201_s1 + $0x190] sm:$0xff] }
  0x42   :  { %3979 = vmatprep.subr.bf16.mxu1 %v4572_v23  ;;  %713 = vmatprep.mubr.f32.mxu1 %v6365_v24  ;;  %v3964_v43 = vpack.c.bf16 %v4766_v62, %v4752_v1  ;;  %v3966_v51 = vpack.c.bf16 %v4785_v30, %v4770_v8  ;;  %v3968_v61 = vpack.c.bf16 %v4808_v54, %v4794_v55  ;;  %v995_v22 = vand.u32 4294901760, %v61_v37  ;;  %v63_v44 = vld [vmem:[%s6201_s1 + $0x110] sm:$0xff] }
  0x43   :  { %v3970_v6 = vpack.c.bf16 %v4824_v35, %v4812_v38  ;;  %v3972_v31 = vpack.c.bf16 %v4865_v3, %v4833_v42  ;;  %v6373_v13 = vand.u32 4294901760, %v4743_v57  ;;  %v1052_v24 = vand.u32 4294901760, %v80_v39 }
  0x44   :  { %3957 = vmatpush3.bf16.msra.mxu0 %v3956_v4  ;;  %v5028_v47 = vsub.f32 %v61_v37, %v995_v22  ;;  %vm4498_vm0 = vmmov 0   ;;  %vm2730_vm1 = vcmask 261120   ;;  %vm3189_vm2 = vcmask 57344  }
  0x45   :  { %3981 = vmatpush3.bf16.msra.mxu1 %v4585_v28  ;;  %3959 = vmatprep.subr.bf16.mxu0 %v3958_v11  ;;  %v1049_v11 = vand.u32 4294901760, %v79_v29 }
  0x46   :  { %3983 = vmatprep.subr.bf16.mxu1 %v4602_v40 }
  0x47   :  { %v5095_v37 = vpack.c.bf16 %v1052_v24, %v1049_v11 }
  0x48   :  { %3961 = vmatpush3.bf16.msra.mxu0 %v3960_v45  ;;  %v6374_v45 = vand.u32 4294901760, %v4752_v1  ;;  %v6379_v1 = vand.u32 4294901760, %v4808_v54  ;;  %v26_v54 = vld [vmem:[%s6200_s0 + $0x18] sm:$0xff] }
  0x49   :  { %3985 = vmatpush3.bf16.msra.mxu1 %v4613_v46  ;;  %3963 = vmatprep.subr.bf16.mxu0 %v3962_v18  ;;  %v6375_v18 = vand.u32 4294901760, %v4766_v62  ;;  %v6378_v62 = vand.u32 4294901760, %v4794_v55  ;;  %6384 = vst [vmem:[#allocation6_spill] sm:$0xff] %v5095_v37 }
  0x4a   :  { %3987 = vmatprep.subr.bf16.mxu1 %v4641_v63 }
  0x4c   :  { %3965 = vmatpush3.bf16.msra.mxu0 %v3964_v43  ;;  %v4028_v43 = vpack.c.bf16 %v6375_v18, %v6374_v45  ;;  %v5105_v45 = vand.u32 4294901760, %v26_v54 }
  0x4d   :  { %3989 = vmatpush3.bf16.msra.mxu1 %v4666_v17  ;;  %3967 = vmatprep.subr.bf16.mxu0 %v3966_v51  ;;  %v81_v51 = vld [vmem:[%s6201_s1 + $0x1a0] sm:$0xff] }
  0x4e   :  { %3991 = vmatprep.subr.bf16.mxu1 %v4684_v50  ;;  %6386 = vst [vmem:[#allocation11_spill] sm:$0xff] %v5105_v45 }
  0x50   :  { %3969 = vmatpush3.bf16.msra.mxu0 %v3968_v61 }
  0x51   :  { %3993 = vmatpush3.bf16.msra.mxu1 %v4708_v5  ;;  %3971 = vmatprep.subr.bf16.mxu0 %v3970_v6  ;;  %v6382_v6 = vand.u32 4294901760, %v4833_v42  ;;  %v65_v42 = vld [vmem:[%s6201_s1 + $0x120] sm:$0xff] }
  0x52   :  { %3995 = vmatprep.subr.bf16.mxu1 %v4726_v49 }
  0x54   :  { %3973 = vmatpush3.bf16.msra.mxu0 %v3972_v31  ;;  %v6383_v31 = vand.u32 4294901760, %v4865_v3  ;;  %v6259_v3 = vand.u32 4294901760, %v5028_v47 }
  0x55   :  { %3997 = vmatpush3.bf16.msra.mxu1 %v6366_v19  ;;  %4007 = vmatprep.subr.bf16.mxu0 %v4006_v7  ;;  %v62_v7 = vld [vmem:[%s6201_s1 + $0x108] sm:$0xff] }
  0x56   :  { %3999 = vmatprep.subr.bf16.mxu1 %v6367_v12  ;;  %v998_v26 = vand.u32 4294901760, %v62_v7 }
  0x57   :  { %609 = vmatmul.mubr.f32.vlgmr.msra.gmra.mrb[2].mxu0 %v4861_v20  ;;  %v6376_v20 = vand.u32 4294901760, %v4770_v8  ;;  %v5062_v8 = vpack.c.bf16 %v6379_v1, %v6378_v62 }
  0x58   :  { %4009 = vmatpush3.bf16.msra.mxu0 %v4008_v53  ;;  %883 = vmatprep.mubr.f32.mxu0 %v6368_v14  ;;  %v1043_v53 = vand.u32 4294901760, %v77_v9  ;;  %v5030_v0 = vsub.f32 %v62_v7, %v998_v26  ;;  %v1055_v7 = vand.u32 4294901760, %v81_v51 }
  0x59   :  { %4001 = vmatpush3.bf16.msra.mxu1 %v6369_v32  ;;  %4011 = vmatprep.subr.bf16.mxu0 %v4010_v34 }
  0x5a   :  { %4003 = vmatprep.subr.bf16.mxu1 %v6370_v33  ;;  %v5018_v34 = vsub.f32 %v77_v9, %v1043_v53  ;;  %v5074_v9 = vpack.c.bf16 %v6383_v31, %v6382_v6  ;;  %v5081_v55 = vpack.c.bf16 %v1046_v16, %v1043_v53  ;;  %v5133_v18 = vsub.f32 %v81_v51, %v1055_v7  ;;  %v68_v51 = vld [vmem:[%s6201_s1 + $0x138] sm:$0xff] }
  0x5c   :  { %4013 = vmatpush3.bf16.msra.mxu0 %v4012_v48  ;;  %v64_v48 = vld [vmem:[%s6201_s1 + $0x118] sm:$0xff] }
  0x5d   :  { %4005 = vmatpush3.bf16.msra.mxu1 %v6371_v27  ;;  %4015 = vmatprep.subr.bf16.mxu0 %v4014_v56  ;;  %v5026_v56 = vsub.f32 %v78_v2, %v1046_v16  ;;  %v1004_v57 = vand.u32 4294901760, %v64_v48  ;;  %v5093_v2 = vpack.c.bf16 %v998_v26, %v995_v22  ;;  %v5099_v16 = vsub.f32 %v79_v29, %v1049_v11  ;;  %v84_v29 = vld [vmem:[%s6201_s1 + $0x1b8] sm:$0xff] }
  0x5e   :  { %4039 = vmatprep.subr.bf16.mxu1 %v4558_v15  ;;  %v6372_v15 = vand.u32 4294901760, %v4728_v52  ;;  %v1001_v52 = vand.u32 4294901760, %v63_v44  ;;  %v1007_v26 = vand.u32 4294901760, %v65_v42 }
  0x60   :  { %717 = vmatmul.mubr.f32.vlgmr.msra.gmra.mrb[2].mxu1 %v236_v36  ;;  %4017 = vmatpush3.bf16.msra.mxu0 %v4934_v10  ;;  %v4026_v4 = vpack.c.bf16 %v6373_v13, %v6372_v15  ;;  %v6377_v36 = vand.u32 4294901760, %v4785_v30  ;;  %v6380_v30 = vand.u32 4294901760, %v4812_v38  ;;  %v6260_v38 = vand.u32 4294901760, %v5026_v56 }
  0x61   :  { %4041 = vmatpush3.bf16.msra.mxu1 %v4568_v21  ;;  %4019 = vmatprep.subr.bf16.mxu0 %v4940_v60  ;;  %v82_v21 = vld [vmem:[%s6201_s1 + $0x1a8] sm:$0xff]  ;;  %v6381_v60 = vand.u32 4294901760, %v4824_v35  ;;  %v5101_v15 = vsub.f32 %v80_v39, %v1052_v24  ;;  %v5103_v13 = vpack.c.bf16 %v1004_v57, %v1001_v52  ;;  %v5119_v39 = vsub.f32 %v64_v48, %v1004_v57 }
  0x62   :  { %v5049_v10 = vpack.c.bf16 %v6377_v36, %v6376_v20  ;;  %4043 = vmatprep.subr.bf16.mxu1 %v4572_v23  ;;  %987 = vmatprep.mubr.f32.mxu1 %v6368_v14  ;;  %v6263_v23 = vand.u32 4294901760, %v5018_v34  ;;  %v66_v35 = vld [vmem:[%s6201_s1 + $0x128] sm:$0xff]  ;;  %v6258_v14 = vand.u32 4294901760, %v5030_v0  ;;  %v1058_v53 = vand.u32 4294901760, %v82_v21 }
  0x63   :  { %v5068_v61 = vpack.c.bf16 %v6381_v60, %v6380_v30  ;;  %6385 = vst [vmem:[#allocation7_spill] sm:$0xff] %v5103_v13  ;;  %v5138_v20 = vsub.f32 %v26_v54, %v5105_v45  ;;  %v6254_v57 = vand.u32 4294901760, %v5099_v16  ;;  %v6253_v62 = vand.u32 4294901760, %v5101_v15 }
  0x64   :  { %4021 = vmatpush3.bf16.msra.mxu0 %v4946_v41  ;;  %v5108_v41 = vsub.f32 %v63_v44, %v1001_v52  ;;  %v1222_v22 = vsub.f32 %v5018_v34, %v6263_v23  ;;  %v1110_v44 = vsub.f32 %v5028_v47, %v6259_v3  ;;  %v1117_v11 = vsub.f32 %v5030_v0, %v6258_v14 }
  0x65   :  { %4045 = vmatpush3.bf16.msra.mxu1 %v4585_v28  ;;  %4023 = vmatprep.subr.bf16.mxu0 %v4952_v59  ;;  %v1010_v28 = vand.u32 4294901760, %v66_v35  ;;  %v83_v59 = vld [vmem:[%s6201_s1 + $0x1b0] sm:$0xff]  ;;  %v5131_v24 = vpack.c.bf16 %v1058_v53, %v1055_v7  ;;  %v5135_v48 = vsub.f32 %v82_v21, %v1058_v53  ;;  %v1064_v52 = vand.u32 4294901760, %v84_v29 }
  0x66   :  { %4047 = vmatprep.subr.bf16.mxu1 %v4602_v40  ;;  %v1229_v40 = vsub.f32 %v5026_v56, %v6260_v38  ;;  %v1061_v36 = vand.u32 4294901760, %v83_v59  ;;  %v1223_v21 = vand.u32 4294901760, %v1222_v22  ;;  %v1111_v60 = vand.u32 4294901760, %v1110_v44 }
  0x67   :  { %6387 = vst [vmem:[#allocation8_spill] sm:$0xff] %v5131_v24  ;;  %v5150_v1 = vpack.c.bf16 %v1010_v28, %v1007_v26  ;;  %v1118_v6 = vand.u32 4294901760, %v1117_v11  ;;  %v6251_v31 = vand.u32 4294901760, %v5108_v41  ;;  %v1016_v7 = vand.u32 4294901760, %v68_v51 }
  0x68   :  { %4025 = vmatpush3.bf16.msra.mxu0 %v4958_v25  ;;  %v67_v25 = vld [vmem:[%s6201_s1 + $0x130] sm:$0xff]  ;;  %v1230_v30 = vand.u32 4294901760, %v1229_v40  ;;  %v6252_v53 = vand.u32 4294901760, %v5119_v39  ;;  %v6264_v22 = vand.u32 4294901760, %v5138_v20  ;;  %v6255_v40 = vand.u32 4294901760, %v5135_v48 }
  0x69   :  { %4049 = vmatpush3.bf16.msra.mxu1 %v4613_v46  ;;  %4027 = vmatprep.subr.bf16.mxu0 %v4026_v4  ;;  %6388 = vst [vmem:[#allocation9_spill] sm:$0xff] %v5150_v1  ;;  %v5152_v46 = vsub.f32 %v65_v42, %v1007_v26  ;;  %v5154_v4 = vsub.f32 %v66_v35, %v1010_v28  ;;  %v1013_v54 = vand.u32 4294901760, %v67_v25 }
  0x6a   :  { %4051 = vmatprep.subr.bf16.mxu1 %v4641_v63  ;;  %v85_v63 = vld [vmem:[%s6201_s1 + $0x1c0] sm:$0xff]  ;;  %v5164_v42 = vpack.c.bf16 %v1064_v52, %v1061_v36  ;;  %v1243_v35 = vsub.f32 %v5101_v15, %v6253_v62  ;;  %v5173_v26 = vsub.f32 %v83_v59, %v1061_v36  ;;  %v5175_v28 = vsub.f32 %v84_v29, %v1064_v52 }
  0x6b   :  { %v5182_v44 = vpack.c.bf16 %v1230_v30, %v1223_v21  ;;  %v5184_v11 = vpack.c.bf16 %v1118_v6, %v1111_v60  ;;  %v1067_v59 = vand.u32 4294901760, %v85_v63  ;;  %v5190_v29 = vpack.c.bf16 %v1016_v7, %v1013_v54 }
  0x6c   :  { %4029 = vmatpush3.bf16.msra.mxu0 %v4028_v43  ;;  %6389 = vst [vmem:[#allocation10_spill] sm:$0xff] %v5164_v42  ;;  %v1236_v43 = vsub.f32 %v5099_v16, %v6254_v57  ;;  %v1131_v36 = vsub.f32 %v5119_v39, %v6252_v53  ;;  %v6256_v52 = vand.u32 4294901760, %v5152_v46  ;;  %v1093_v21 = vsub.f32 %v5138_v20, %v6264_v22  ;;  %v70_v57 = vld [vmem:[%s6201_s1 + $0x148] sm:$0xff] }
  0x6d   :  { %4053 = vmatpush3.bf16.msra.mxu1 %v4666_v17  ;;  %4031 = vmatprep.subr.bf16.mxu0 %v5049_v10  ;;  %v86_v17 = vld [vmem:[%s6201_s1 + $0x1c8] sm:$0xff]  ;;  %v6257_v10 = vand.u32 4294901760, %v5133_v18  ;;  %6390 = vst [vmem:[#allocation12_spill] sm:$0xff] %v5190_v29  ;;  %v1244_v60 = vand.u32 4294901760, %v1243_v35  ;;  %v5206_v53 = vsub.f32 %v67_v25, %v1013_v54  ;;  %v5208_v62 = vsub.f32 %v68_v51, %v1016_v7 }
  0x6e   :  { %4055 = vmatprep.subr.bf16.mxu1 %v4684_v50  ;;  %v1124_v50 = vsub.f32 %v5108_v41, %v6251_v31  ;;  %v1237_v30 = vand.u32 4294901760, %v1236_v43  ;;  %v1070_v6 = vand.u32 4294901760, %v86_v17  ;;  %v6261_v31 = vand.u32 4294901760, %v5154_v4 }
  0x6f   :  { %v5216_v35 = vsub.f32 %v85_v63, %v1067_v59  ;;  %v6265_v25 = vand.u32 4294901760, %v5175_v28  ;;  %v1132_v51 = vand.u32 4294901760, %v1131_v36  ;;  %v1138_v7 = vsub.f32 %v5152_v46, %v6256_v52  ;;  %v87_v63 = vld [vmem:[%s6201_s1 + $0x1d0] sm:$0xff] }
  0x70   :  { %4033 = vmatpush3.bf16.msra.mxu0 %v5062_v8  ;;  %v69_v8 = vld [vmem:[%s6201_s1 + $0x140] sm:$0xff]  ;;  %v1125_v43 = vand.u32 4294901760, %v1124_v50  ;;  %v88_v50 = vld [vmem:[%s6201_s1 + $0x1d8] sm:$0xff]  ;;  %v5237_v36 = vpack.c.bf16 %v1070_v6, %v1067_v59  ;;  %v1145_v52 = vsub.f32 %v5154_v4, %v6261_v31  ;;  %v1022_v38 = vand.u32 4294901760, %v70_v57 }
  0x71   :  { %4057 = vmatpush3.bf16.msra.mxu1 %v4708_v5  ;;  %4035 = vmatprep.subr.bf16.mxu0 %v5068_v61  ;;  %v1250_v5 = vsub.f32 %v5133_v18, %v6257_v10  ;;  %v1257_v61 = vsub.f32 %v5135_v48, %v6255_v40  ;;  %v1019_v54 = vand.u32 4294901760, %v69_v8  ;;  %v1094_v40 = vand.u32 4294901760, %v1093_v21  ;;  %v72_v59 = vld [vmem:[%s6201_s1 + $0x158] sm:$0xff] }
  0x72   :  { %4059 = vmatprep.subr.bf16.mxu1 %v4726_v49  ;;  %v6262_v49 = vand.u32 4294901760, %v5173_v26  ;;  %6391 = vst [vmem:[#allocation13_spill] sm:$0xff] %v5237_v36  ;;  %v5243_v10 = vsub.f32 %v86_v17, %v1070_v6  ;;  %v1073_v21 = vand.u32 4294901760, %v87_v63  ;;  %v1271_v17 = vsub.f32 %v5175_v28, %v6265_v25 }
  0x73   :  { %v1251_v14 = vand.u32 4294901760, %v1250_v5  ;;  %v1258_v3 = vand.u32 4294901760, %v1257_v61  ;;  %v5261_v6 = vsub.f32 %v69_v8, %v1019_v54  ;;  %v1139_v5 = vand.u32 4294901760, %v1138_v7 }
  0x74   :  { %4037 = vmatpush3.bf16.msra.mxu0 %v5074_v9  ;;  %v5235_v9 = vpack.c.bf16 %v1244_v60, %v1237_v30  ;;  %v1076_v30 = vand.u32 4294901760, %v88_v50  ;;  %v5259_v60 = vpack.c.bf16 %v1132_v51, %v1125_v43  ;;  %v1146_v31 = vand.u32 4294901760, %v1145_v52  ;;  %v89_v43 = vld [vmem:[%s6201_s1 + $0x1e0] sm:$0xff] }
  0x75   :  { %4061 = vmatpush3.bf16.msra.mxu1 %v6366_v19  ;;  %4071 = vmatprep.subr.bf16.mxu0 %v5081_v55  ;;  %v71_v19 = vld [vmem:[%s6201_s1 + $0x150] sm:$0xff]  ;;  %v1028_v23 = vand.u32 4294901760, %v72_v59  ;;  %v5271_v8 = vpack.c.bf16 %v1258_v3, %v1251_v14  ;;  %v5273_v51 = vpack.c.bf16 %v1022_v38, %v1019_v54  ;;  %v6266_v52 = vand.u32 4294901760, %v5216_v35 }
  0x76   :  { %4063 = vmatprep.subr.bf16.mxu1 %v6367_v12  ;;  %v1264_v12 = vsub.f32 %v5173_v26, %v6262_v49  ;;  %v1025_v49 = vand.u32 4294901760, %v71_v19  ;;  %v5281_v7 = vpack.c.bf16 %v1076_v30, %v1073_v21  ;;  %v1272_v22 = vand.u32 4294901760, %v1271_v17 }
  0x77   :  { %885 = vmatmul.mubr.f32.vlgmr.msra.gmra.mrb[4].mxu0 %v4848_v58  ;;  %v5292_v3 = vsub.f32 %v88_v50, %v1076_v30  ;;  %v6396_v14 = vand.u32 4294901760, %v5206_v53  ;;  %v1079_v54 = vand.u32 4294901760, %v89_v43  ;;  %v6397_v61 = vand.u32 4294901760, %v5208_v62 }
  0x78   :  { %4073 = vmatpush3.bf16.msra.mxu0 %v5093_v2  ;;  %1095 = vmatprep.mubr.f32.mxu0 %v1094_v40  ;;  %v5275_v40 = vsub.f32 %v70_v57, %v1022_v38  ;;  %6393 = vst [vmem:[#allocation15_spill] sm:$0xff] %v5281_v7  ;;  %v1265_v25 = vand.u32 4294901760, %v1264_v12  ;;  %v5290_v38 = vsub.f32 %v87_v63, %v1073_v21 }
  0x79   :  { %4065 = vmatpush3.bf16.msra.mxu1 %v6369_v32  ;;  %4075 = vmatprep.subr.bf16.mxu0 %v5095_v37  ;;  %v90_v32 = vld [vmem:[%s6201_s1 + $0x1e8] sm:$0xff]  ;;  %6395 = vst [vmem:[#allocation17_spill] sm:$0xff] %v5292_v3  ;;  %v1152_v57 = vsub.f32 %v5206_v53, %v6396_v14  ;;  %v5299_v12 = vpack.c.bf16 %v1146_v31, %v1139_v5  ;;  %v6403_v37 = vand.u32 4294901760, %v5292_v3 }
  0x7a   :  { %4067 = vmatprep.subr.bf16.mxu1 %v6370_v33  ;;  %6392 = vst [vmem:[#allocation14_spill] sm:$0xff] %v5275_v40  ;;  %v5287_v33 = vld [vmem:[%s6201_s1 + $0x160] sm:$0xff]  ;;  %6394 = vst [vmem:[#allocation16_spill] sm:$0xff] %v5290_v38  ;;  %v5301_v17 = vpack.c.bf16 %v1028_v23, %v1025_v49  ;;  %v1159_v63 = vsub.f32 %v5208_v62, %v6397_v61  ;;  %v1082_v21 = vand.u32 4294901760, %v90_v32  ;;  %v5317_v31 = vld [vmem:[%s6201_s1 + $0x168] sm:$0xff]  ;;  %v6398_v61 = vand.u32 4294901760, %v5243_v10 }
  0x7b   :  { %v5307_v50 = vsub.f32 %v71_v19, %v1025_v49  ;;  %v5309_v30 = vsub.f32 %v72_v59, %v1028_v23  ;;  %v4114_v14 = vpack.c.bf16 %v1272_v22, %v1265_v25  ;;  %v5328_v19 = vld [vmem:[%s6201_s1 + $0x1f0] sm:$0xff]  ;;  %v5333_v59 = vld [vmem:[%s6201_s1 + $0x1f8] sm:$0xff]  ;;  %v1153_v22 = vand.u32 4294901760, %v1152_v57 }
  0x7c   :  { %4077 = vmatpush3.bf16.msra.mxu0 %v5103_v13  ;;  %v5337_v25 = vsub.f32 %v89_v43, %v1079_v54  ;;  %v25_v23 = vld [vmem:[%s6200_s0 + $0x10] sm:$0xff]  ;;  %v1160_v49 = vand.u32 4294901760, %v1159_v63  ;;  %v5346_v5 = vpack.c.bf16 %v1082_v21, %v1079_v54  ;;  %v1034_v43 = vand.u32 4294901760, %v5317_v31 }
  0x7d   :  { %4069 = vmatpush3.bf16.msra.mxu1 %v6371_v27  ;;  %4079 = vmatprep.subr.bf16.mxu0 %v5131_v24  ;;  %v1278_v27 = vsub.f32 %v5216_v35, %v6266_v52  ;;  %v6399_v52 = vand.u32 4294901760, %v5287_v33  ;;  %v5362_v54 = vld [vmem:[%s6201_s1 + $0x170] sm:$0xff]  ;;  %v6402_v24 = vand.u32 4294901760, %v5290_v38 }
  0x7e   :  { %4103 = vmatprep.subr.bf16.mxu1 %v5182_v44  ;;  %v1285_v44 = vsub.f32 %v5243_v10, %v6398_v61 }
  0x7f   :  { %v1279_v57 = vand.u32 4294901760, %v1278_v27  ;;  %v5355_v61 = vsub.f32 %v5287_v33, %v6399_v52  ;;  %v6400_v52 = vand.u32 4294901760, %v5261_v6  ;;  %v1292_v13 = vsub.f32 %v5290_v38, %v6402_v24 }
  0x80   :  { %989 = vmatmul.mubr.f32.vlgmr.msra.gmra.mrb[4].mxu1 %v4848_v58  ;;  %4081 = vmatpush3.bf16.msra.mxu0 %v5150_v1  ;;  %v5348_v58 = vsub.f32 %v90_v32, %v1082_v21  ;;  %v1085_v1 = vand.u32 4294901760, %v5328_v19  ;;  %v5367_v32 = vld [vmem:[%s6201_s1 + $0x178] sm:$0xff]  ;;  %v6401_v21 = vand.u32 4294901760, %v5275_v40 }
  0x81   :  { %4105 = vmatpush3.bf16.msra.mxu1 %v5184_v11  ;;  %4083 = vmatprep.subr.bf16.mxu0 %v5164_v42  ;;  %v1088_v11 = vand.u32 4294901760, %v5333_v59  ;;  %v1166_v63 = vsub.f32 %v5261_v6, %v6400_v52  ;;  %v5376_v42 = vand.u32 4294901760, %v25_v23  ;;  %v1040_v24 = vand.u32 4294901760, %v5367_v32 }
  0x82   :  { %4107 = vmatprep.subr.bf16.mxu1 %v5235_v9  ;;  %1331 = vmatprep.mubr.f32.mxu1 %v5105_v45  ;;  %v1286_v9 = vand.u32 4294901760, %v1285_v44  ;;  %v1173_v27 = vsub.f32 %v5275_v40, %v6401_v21  ;;  %v1299_v44 = vsub.f32 %v5292_v3, %v6403_v37  ;;  %v4116_v21 = vpack.c.bf16 %v1160_v49, %v1153_v22 }
  0x83   :  { %v5390_v40 = vsub.f32 %v5317_v31, %v1034_v43  ;;  %v5396_v37 = vsub.f32 %v5328_v19, %v1085_v1  ;;  %v5399_v45 = vsub.f32 %v5333_v59, %v1088_v11  ;;  %v6291_v52 = vand.u32 4294901760, %v5348_v58 }
  0x84   :  { %4085 = vmatpush3.bf16.msra.mxu0 %v5190_v29  ;;  %v1037_v29 = vand.u32 4294901760, %v5362_v54  ;;  %v4118_v49 = vpack.c.bf16 %v1286_v9, %v1279_v57  ;;  %v1167_v22 = vand.u32 4294901760, %v1166_v63  ;;  %v1174_v31 = vand.u32 4294901760, %v1173_v27 }
  0x85   :  { %4109 = vmatpush3.bf16.msra.mxu1 %v5259_v60  ;;  %4087 = vmatprep.subr.bf16.mxu0 %v5237_v36  ;;  %v5404_v36 = vsub.f32 %v25_v23, %v5376_v42  ;;  %v1293_v3 = vand.u32 4294901760, %v1292_v13  ;;  %v6404_v19 = vand.u32 4294901760, %v5307_v50  ;;  %v6405_v59 = vand.u32 4294901760, %v5309_v30 }
  0x86   :  { %4111 = vmatprep.subr.bf16.mxu1 %v5271_v8  ;;  %v1300_v8 = vand.u32 4294901760, %v1299_v44  ;;  %v5416_v57 = vsub.f32 %v5362_v54, %v1037_v29  ;;  %v5419_v23 = vsub.f32 %v5367_v32, %v1040_v24  ;;  %v6406_v63 = vand.u32 4294901760, %v5337_v25 }
  0x87   :  { %v1180_v38 = vsub.f32 %v5307_v50, %v6404_v19  ;;  %v1187_v60 = vsub.f32 %v5309_v30, %v6405_v59  ;;  %v1319_v44 = vand.u32 4294901760, %v5396_v37  ;;  %v6407_v32 = vand.u32 4294901760, %v5287_v33 }
  0x88   :  { %4089 = vmatpush3.bf16.msra.mxu0 %v5273_v51  ;;  %v1306_v27 = vsub.f32 %v5337_v25, %v6406_v63  ;;  %v5435_v59 = vpack.c.bf16 %v1088_v11, %v1085_v1  ;;  %v4120_v9 = vpack.c.bf16 %v1174_v31, %v1167_v22  ;;  %v4122_v63 = vpack.c.bf16 %v1300_v8, %v1293_v3 }
  0x89   :  { %4113 = vmatpush3.bf16.msra.mxu1 %v5299_v12  ;;  %4091 = vmatprep.subr.bf16.mxu0 %v5281_v7  ;;  %v1313_v12 = vsub.f32 %v5348_v58, %v6291_v52  ;;  %v5433_v19 = vpack.c.bf16 %v1034_v43, %v6407_v32  ;;  %v1181_v13 = vand.u32 4294901760, %v1180_v38  ;;  %v1188_v7 = vand.u32 4294901760, %v1187_v60 }
  0x8a   :  { %4115 = vmatprep.subr.bf16.mxu1 %v4114_v14  ;;  %v1098_v14 = vand.u32 4294901760, %v5404_v36  ;;  %v6408_v52 = vand.u32 4294901760, %v5355_v61  ;;  %v6409_v33 = vand.u32 4294901760, %v5390_v40  ;;  %v6292_v43 = vand.u32 4294901760, %v5416_v57 }
  0x8b   :  { %v6293_v11 = vand.u32 4294901760, %v5419_v23  ;;  %v1307_v22 = vand.u32 4294901760, %v1306_v27  ;;  %v1314_v3 = vand.u32 4294901760, %v1313_v12  ;;  %v1320_v38 = vsub.f32 %v5396_v37, %v1319_v44 }
  0x8c   :  { %4093 = vmatpush3.bf16.msra.mxu0 %v5301_v17  ;;  %v1194_v54 = vsub.f32 %v5355_v61, %v6408_v52  ;;  %v1201_v1 = vsub.f32 %v5390_v40, %v6409_v33  ;;  %v1099_v52 = vsub.f32 %v5404_v36, %v1098_v14  ;;  %v5458_v31 = vpack.c.bf16 %v1040_v24, %v1037_v29 }
  0x8d   :  { %4117 = vmatpush3.bf16.msra.mxu1 %v4116_v21  ;;  %4095 = vmatprep.subr.bf16.mxu0 %v5346_v5  ;;  %v6410_v21 = vand.u32 4294901760, %v5399_v45  ;;  %v4124_v8 = vpack.c.bf16 %v1188_v7, %v1181_v13  ;;  %v1208_v32 = vsub.f32 %v5416_v57, %v6292_v43  ;;  %v1215_v33 = vsub.f32 %v5419_v23, %v6293_v11 }
  0x8e   :  { %4119 = vmatprep.subr.bf16.mxu1 %v4118_v49  ;;  %v4134_v49 = vpack.c.bf16 %v5026_v56, %v5018_v34  ;;  %v1195_v27 = vand.u32 4294901760, %v1194_v54  ;;  %v1202_v12 = vand.u32 4294901760, %v1201_v1  ;;  %v4126_v29 = vpack.c.bf16 %v1314_v3, %v1307_v22 }
  0x8f   :  { %v1327_v60 = vsub.f32 %v5399_v45, %v6410_v21  ;;  %v1321_v24 = vand.u32 4294901760, %v1320_v38  ;;  %v1100_v13 = vand.u32 4294901760, %v1099_v52  ;;  %v4138_v1 = vpack.c.bf16 %v5101_v15, %v5099_v16  ;;  %v6411_v52 = vld [vmem:[#allocation6_spill] sm:$0xff] }
  0x90   :  { %4097 = vmatpush3.bf16.msra.mxu0 %v5433_v19  ;;  %v4128_v54 = vpack.c.bf16 %v1202_v12, %v1195_v27  ;;  %v1209_v21 = vand.u32 4294901760, %v1208_v32  ;;  %v1216_v43 = vand.u32 4294901760, %v1215_v33  ;;  %v4142_v3 = vpack.c.bf16 %v5135_v48, %v5133_v18  ;;  %v6414_v12 = vld [vmem:[#allocation7_spill] sm:$0xff]  ;;  %v6415_v32 = vld [vmem:[#allocation16_spill] sm:$0xff]  ;;  %v6416_v33 = vld [vmem:[#allocation17_spill] sm:$0xff] }
  0x91   :  { %4121 = vmatpush3.bf16.msra.mxu1 %v4120_v9  ;;  %4099 = vmatprep.subr.bf16.mxu0 %v5435_v59  ;;  %v1328_v7 = vand.u32 4294901760, %v1327_v60  ;;  %v4136_v9 = vpack.c.bf16 %v5030_v0, %v5028_v47  ;;  %v4144_v38 = vpack.c.bf16 %v5154_v4, %v5152_v46  ;;  %v4146_v60 = vpack.c.bf16 %v5175_v28, %v5173_v26 }
  0x92   :  { %4123 = vmatprep.subr.bf16.mxu1 %v4122_v63  ;;  %v4140_v63 = vpack.c.bf16 %v5119_v39, %v5108_v41  ;;  %v4132_v22 = vpack.c.bf16 %v1216_v43, %v1209_v21  ;;  %v4148_v43 = vpack.c.bf16 %v5208_v62, %v5206_v53  ;;  %v4162_v21 = vpack.c.bf16 %v5399_v45, %v5396_v37 }
  0x93   :  { %v4130_v11 = vpack.c.bf16 %v1328_v7, %v1321_v24  ;;  %v6417_v24 = vld [vmem:[#allocation8_spill] sm:$0xff]  ;;  %v4156_v7 = vpack.c.bf16 %v5309_v30, %v5307_v50 }
  0x94   :  { %4101 = vmatpush3.bf16.msra.mxu0 %v5458_v31 }
  0x95   :  { %4125 = vmatpush3.bf16.msra.mxu1 %v4124_v8  ;;  %4135 = vmatprep.subr.bf16.mxu0 %v4134_v49  ;;  %v6412_v8 = vand.u32 4294901760, %v5138_v20  ;;  %v6413_v49 = vld [vmem:[#allocation14_spill] sm:$0xff] }
  0x96   :  { %4127 = vmatprep.subr.bf16.mxu1 %v4126_v29  ;;  %v4152_v27 = vpack.c.bf16 %v6413_v49, %v5261_v6  ;;  %v4154_v29 = vpack.c.bf16 %v6416_v33, %v6415_v32 }
  0x97   :  { %1101 = vmatmul.mubr.f32.vlgmr.msra.gmra.mrb[6].mxu0 %v1100_v13  ;;  %v6418_v13 = vld [vmem:[#allocation9_spill] sm:$0xff] }
  0x98   :  { %4137 = vmatpush3.bf16.msra.mxu0 %v4136_v9  ;;  %1468 = vmatprep.mubr.f32.mxu0 %v5138_v20  ;;  %v4158_v20 = vpack.c.bf16 %v5348_v58, %v5337_v25  ;;  %v6419_v9 = vld [vmem:[#allocation10_spill] sm:$0xff] }
  0x99   :  { %4129 = vmatpush3.bf16.msra.mxu1 %v4128_v54  ;;  %4139 = vmatprep.subr.bf16.mxu0 %v4138_v1  ;;  %v4160_v54 = vpack.c.bf16 %v5390_v40, %v5355_v61  ;;  %v6420_v1 = vld [vmem:[#allocation12_spill] sm:$0xff] }
  0x9a   :  { %4131 = vmatprep.subr.bf16.mxu1 %v4130_v11  ;;  %v4150_v11 = vpack.c.bf16 %v5243_v10, %v5216_v35 }
  0x9c   :  { %4141 = vmatpush3.bf16.msra.mxu0 %v4140_v63  ;;  %v6421_v63 = vld [vmem:[#allocation13_spill] sm:$0xff] }
  0x9d   :  { %4133 = vmatpush3.bf16.msra.mxu1 %v4132_v22  ;;  %4143 = vmatprep.subr.bf16.mxu0 %v4142_v3  ;;  %v4164_v22 = vpack.c.bf16 %v5419_v23, %v5416_v57  ;;  %v6422_v3 = vand.u32 4294901760, %v5018_v34  ;;  %v109_v34 = vld [vmem:[%s6201_s1 + $0x280] sm:$0xff] }
  0x9e   :  { %4167 = vmatprep.subr.bf16.mxu1 %v5081_v55 }
  0xa0   :  { %1333 = vmatmul.mubr.f32.vlgmr.msra.gmra.mrb[6].mxu1 %v5376_v42  ;;  %4145 = vmatpush3.bf16.msra.mxu0 %v4144_v38  ;;  %v6423_v38 = vand.u32 4294901760, %v5026_v56  ;;  %v6429_v56 = vand.u32 4294901760, %v5108_v41  ;;  %v1905_v41 = vand.u32 4294901760, %v109_v34 }
  0xa1   :  { %4169 = vmatpush3.bf16.msra.mxu1 %v5093_v2  ;;  %4147 = vmatprep.subr.bf16.mxu0 %v4146_v60 }
  0xa2   :  { %4171 = vmatprep.subr.bf16.mxu1 %v6411_v52  ;;  %1575 = vmatprep.mubr.f32.mxu1 %v6412_v8  ;;  %v4198_v60 = vpack.c.bf16 %v6423_v38, %v6422_v3  ;;  %v6426_v8 = vand.u32 4294901760, %v5030_v0  ;;  %v94_v3 = vld [vmem:[%s6201_s1 + $0x208] sm:$0xff] }
  0xa4   :  { %4149 = vmatpush3.bf16.msra.mxu0 %v4148_v43  ;;  %v6424_v43 = vld [vmem:[#allocation15_spill] sm:$0xff] }
  0xa5   :  { %4173 = vmatpush3.bf16.msra.mxu1 %v6414_v12  ;;  %4151 = vmatprep.subr.bf16.mxu0 %v4150_v11  ;;  %v6425_v11 = vand.u32 4294901760, %v5028_v47  ;;  %v6430_v47 = vand.u32 4294901760, %v5119_v39  ;;  %v93_v39 = vld [vmem:[%s6201_s1 + $0x200] sm:$0xff] }
  0xa6   :  { %4175 = vmatprep.subr.bf16.mxu1 %v6417_v24 }
  0xa7   :  { %v4204_v0 = vpack.c.bf16 %v6430_v47, %v6429_v56  ;;  %v6439_v56 = vand.u32 4294901760, %v5208_v62  ;;  %v6443_v62 = vand.u32 4294901760, %v6413_v49  ;;  %v6447_v49 = vand.u32 4294901760, %v5309_v30  ;;  %v28_v30 = vld [vmem:[%s6200_s0 + $0x28] sm:$0xff] }
  0xa8   :  { %4153 = vmatpush3.bf16.msra.mxu0 %v4152_v27  ;;  %v4200_v27 = vpack.c.bf16 %v6426_v8, %v6425_v11  ;;  %v111_v11 = vld [vmem:[%s6201_s1 + $0x290] sm:$0xff]  ;;  %v112_v8 = vld [vmem:[%s6201_s1 + $0x298] sm:$0xff] }
  0xa9   :  { %4177 = vmatpush3.bf16.msra.mxu1 %v6418_v13  ;;  %4155 = vmatprep.subr.bf16.mxu0 %v4154_v29  ;;  %v6427_v29 = vand.u32 4294901760, %v5099_v16  ;;  %v6432_v16 = vand.u32 4294901760, %v5133_v18  ;;  %v6434_v18 = vand.u32 4294901760, %v5152_v46 }
  0xaa   :  { %4179 = vmatprep.subr.bf16.mxu1 %v6419_v9 }
  0xac   :  { %4157 = vmatpush3.bf16.msra.mxu0 %v4156_v7  ;;  %v6428_v7 = vand.u32 4294901760, %v5101_v15  ;;  %v6433_v15 = vand.u32 4294901760, %v5135_v48  ;;  %v6435_v48 = vand.u32 4294901760, %v5154_v4  ;;  %v1860_v4 = vand.u32 4294901760, %v94_v3 }
  0xad   :  { %4181 = vmatpush3.bf16.msra.mxu1 %v6420_v1  ;;  %4159 = vmatprep.subr.bf16.mxu0 %v4158_v20 }
  0xae   :  { %4183 = vmatprep.subr.bf16.mxu1 %v6421_v63  ;;  %v4202_v20 = vpack.c.bf16 %v6428_v7, %v6427_v29  ;;  %v4208_v38 = vpack.c.bf16 %v6435_v48, %v6434_v18  ;;  %v6437_v29 = vand.u32 4294901760, %v5175_v28  ;;  %v1857_v7 = vand.u32 4294901760, %v93_v39 }
  0xaf   :  { %v1914_v48 = vand.u32 4294901760, %v112_v8 }
  0xb0   :  { %4161 = vmatpush3.bf16.msra.mxu0 %v4160_v54  ;;  %v6431_v54 = vld [vmem:[#allocation11_spill] sm:$0xff] }
  0xb1   :  { %4185 = vmatpush3.bf16.msra.mxu1 %v5273_v51  ;;  %4163 = vmatprep.subr.bf16.mxu0 %v4162_v21  ;;  %v4206_v21 = vpack.c.bf16 %v6433_v15, %v6432_v16  ;;  %v6441_v16 = vand.u32 4294901760, %v5243_v10  ;;  %v6445_v10 = vand.u32 4294901760, %v6416_v33  ;;  %v6448_v33 = vand.u32 4294901760, %v5337_v25 }
  0xb2   :  { %4187 = vmatprep.subr.bf16.mxu1 %v6424_v43  ;;  %v6450_v25 = vand.u32 4294901760, %v5355_v61  ;;  %v6454_v61 = vand.u32 4294901760, %v5419_v23  ;;  %v5659_v23 = vand.u32 4294901760, %v28_v30 }
  0xb4   :  { %4165 = vmatpush3.bf16.msra.mxu0 %v4164_v22  ;;  %v110_v22 = vld [vmem:[%s6201_s1 + $0x288] sm:$0xff]  ;;  %6456 = vst [vmem:[#allocation14_spill] sm:$0xff] %v5659_v23 }
  0xb5   :  { %4189 = vmatpush3.bf16.msra.mxu1 %v5301_v17  ;;  %4199 = vmatprep.subr.bf16.mxu0 %v4198_v60  ;;  %v1908_v60 = vand.u32 4294901760, %v110_v22 }
  0xb6   :  { %4191 = vmatprep.subr.bf16.mxu1 %v5346_v5 }
  0xb7   :  { %1471 = vmatmul.mubr.f32.vlgmr.msra.gmra.mrb[8].mxu0 %v5404_v36  ;;  %v5616_v36 = vsub.f32 %v93_v39, %v1857_v7 }
  0xb8   :  { %4201 = vmatpush3.bf16.msra.mxu0 %v4200_v27  ;;  %1745 = vmatprep.mubr.f32.mxu0 %v6431_v54  ;;  %v6436_v27 = vand.u32 4294901760, %v5173_v26  ;;  %v95_v26 = vld [vmem:[%s6201_s1 + $0x210] sm:$0xff] }
  0xb9   :  { %4193 = vmatpush3.bf16.msra.mxu1 %v5433_v19  ;;  %4203 = vmatprep.subr.bf16.mxu0 %v4202_v20  ;;  %v6438_v20 = vand.u32 4294901760, %v5206_v53  ;;  %v6442_v53 = vand.u32 4294901760, %v5261_v6  ;;  %v6446_v6 = vand.u32 4294901760, %v5307_v50  ;;  %v1863_v50 = vand.u32 4294901760, %v95_v26 }
  0xba   :  { %4195 = vmatprep.subr.bf16.mxu1 %v5435_v59  ;;  %v4210_v46 = vpack.c.bf16 %v6437_v29, %v6436_v27  ;;  %v113_v27 = vld [vmem:[%s6201_s1 + $0x2a0] sm:$0xff]  ;;  %v114_v29 = vld [vmem:[%s6201_s1 + $0x2a8] sm:$0xff] }
  0xbb   :  { %v4212_v47 = vpack.c.bf16 %v6439_v56, %v6438_v20  ;;  %v4216_v28 = vpack.c.bf16 %v6443_v62, %v6442_v53  ;;  %v6449_v20 = vand.u32 4294901760, %v5348_v58  ;;  %v6451_v58 = vand.u32 4294901760, %v5390_v40 }
  0xbc   :  { %4205 = vmatpush3.bf16.msra.mxu0 %v4204_v0  ;;  %v6440_v0 = vand.u32 4294901760, %v5216_v35  ;;  %v6444_v35 = vand.u32 4294901760, %v6415_v32  ;;  %v5605_v32 = vpack.c.bf16 %v6447_v49, %v6446_v6  ;;  %v1920_v39 = vand.u32 4294901760, %v114_v29 }
  0xbd   :  { %4197 = vmatpush3.bf16.msra.mxu1 %v5458_v31  ;;  %4207 = vmatprep.subr.bf16.mxu0 %v4206_v21  ;;  %v5577_v21 = vsub.f32 %v109_v34, %v1905_v41  ;;  %v1911_v34 = vand.u32 4294901760, %v111_v11  ;;  %v5611_v56 = vpack.c.bf16 %v6449_v20, %v6448_v33  ;;  %v5646_v62 = vsub.f32 %v112_v8, %v1914_v48  ;;  %v115_v8 = vld [vmem:[%s6201_s1 + $0x2b0] sm:$0xff] }
  0xbe   :  { %4231 = vmatprep.subr.bf16.mxu1 %v5081_v55  ;;  %v4214_v15 = vpack.c.bf16 %v6441_v16, %v6440_v0  ;;  %v96_v55 = vld [vmem:[%s6201_s1 + $0x218] sm:$0xff]  ;;  %v4218_v18 = vpack.c.bf16 %v6445_v10, %v6444_v35  ;;  %v5613_v0 = vsub.f32 %v110_v22, %v1908_v60  ;;  %v5628_v22 = vpack.c.bf16 %v6451_v58, %v6450_v25 }
  0xbf   :  { %v5644_v40 = vsub.f32 %v111_v11, %v1911_v34  ;;  %v5650_v35 = vpack.c.bf16 %v1860_v4, %v1857_v7  ;;  %v116_v7 = vld [vmem:[%s6201_s1 + $0x2b8] sm:$0xff]  ;;  %v6296_v6 = vand.u32 4294901760, %v5646_v62  ;;  %v5690_v49 = vsub.f32 %v28_v30, %v5659_v23 }
  0xc0   :  { %1579 = vmatmul.mubr.f32.vlgmr.msra.gmra.mrb[8].mxu1 %v1098_v14  ;;  %4209 = vmatpush3.bf16.msra.mxu0 %v4208_v38  ;;  %v5618_v14 = vsub.f32 %v94_v3, %v1860_v4  ;;  %v1866_v38 = vand.u32 4294901760, %v96_v55  ;;  %v6305_v3 = vand.u32 4294901760, %v5577_v21  ;;  %v6303_v37 = vand.u32 4294901760, %v5613_v0 }
  0xc1   :  { %4233 = vmatpush3.bf16.msra.mxu1 %v5093_v2  ;;  %4211 = vmatprep.subr.bf16.mxu0 %v4210_v46  ;;  %v1917_v2 = vand.u32 4294901760, %v113_v27  ;;  %v6452_v46 = vand.u32 4294901760, %v5399_v45  ;;  %6455 = vst [vmem:[#allocation6_spill] sm:$0xff] %v5650_v35  ;;  %v97_v45 = vld [vmem:[%s6201_s1 + $0x220] sm:$0xff] }
  0xc2   :  { %4235 = vmatprep.subr.bf16.mxu1 %v6411_v52  ;;  %1849 = vmatprep.mubr.f32.mxu1 %v6431_v54  ;;  %v6453_v52 = vand.u32 4294901760, %v5416_v57  ;;  %v5648_v54 = vpack.c.bf16 %v1908_v60, %v1905_v41  ;;  %v98_v57 = vld [vmem:[%s6201_s1 + $0x228] sm:$0xff]  ;;  %v5664_v41 = vpack.c.bf16 %v1866_v38, %v1863_v50  ;;  %v6302_v60 = vand.u32 4294901760, %v5616_v36 }
  0xc3   :  { %v5636_v16 = vpack.c.bf16 %v6452_v46, %v1319_v44  ;;  %v5662_v44 = vpack.c.bf16 %v1914_v48, %v1911_v34  ;;  %v6298_v11 = vand.u32 4294901760, %v5618_v14  ;;  %v5677_v4 = vsub.f32 %v96_v55, %v1866_v38 }
  0xc4   :  { %v5642_v53 = vpack.c.bf16 %v6454_v61, %v6453_v52  ;;  %4213 = vmatpush3.bf16.msra.mxu0 %v4212_v47  ;;  %6458 = vst [vmem:[#allocation16_spill] sm:$0xff] %v5664_v41  ;;  %v5679_v47 = vpack.c.bf16 %v1920_v39, %v1917_v2  ;;  %v1869_v10 = vand.u32 4294901760, %v97_v45  ;;  %v1872_v34 = vand.u32 4294901760, %v98_v57 }
  0xc5   :  { %4237 = vmatpush3.bf16.msra.mxu1 %v6414_v12  ;;  %4215 = vmatprep.subr.bf16.mxu0 %v4214_v15  ;;  %6457 = vst [vmem:[#allocation7_spill] sm:$0xff] %v5662_v44  ;;  %v5675_v12 = vsub.f32 %v95_v26, %v1863_v50  ;;  %v2084_v15 = vsub.f32 %v5577_v21, %v6305_v3  ;;  %v6297_v48 = vand.u32 4294901760, %v5644_v40  ;;  %v1923_v26 = vand.u32 4294901760, %v115_v8 }
  0xc6   :  { %4239 = vmatprep.subr.bf16.mxu1 %v6417_v24  ;;  %6459 = vst [vmem:[#allocation17_spill] sm:$0xff] %v5679_v47  ;;  %v2091_v24 = vsub.f32 %v5613_v0, %v6303_v37  ;;  %v1926_v55 = vand.u32 4294901760, %v116_v7  ;;  %v5693_v33 = vsub.f32 %v113_v27, %v1917_v2  ;;  %v1972_v20 = vsub.f32 %v5616_v36, %v6302_v60 }
  0xc7   :  { %v5702_v50 = vsub.f32 %v114_v29, %v1920_v39  ;;  %v2085_v38 = vand.u32 4294901760, %v2084_v15  ;;  %v6295_v27 = vand.u32 4294901760, %v5677_v4  ;;  %v5709_v30 = vpack.c.bf16 %v1872_v34, %v1869_v10  ;;  %v100_v29 = vld [vmem:[%s6201_s1 + $0x238] sm:$0xff] }
  0xc8   :  { %4217 = vmatpush3.bf16.msra.mxu0 %v4216_v28  ;;  %v1979_v28 = vsub.f32 %v5618_v14, %v6298_v11  ;;  %v5711_v25 = vsub.f32 %v97_v45, %v1869_v10  ;;  %v2098_v58 = vsub.f32 %v5644_v40, %v6297_v48  ;;  %v2092_v2 = vand.u32 4294901760, %v2091_v24 }
  0xc9   :  { %4241 = vmatpush3.bf16.msra.mxu1 %v6418_v13  ;;  %4219 = vmatprep.subr.bf16.mxu0 %v4218_v18  ;;  %v99_v13 = vld [vmem:[%s6201_s1 + $0x230] sm:$0xff]  ;;  %v6294_v18 = vand.u32 4294901760, %v5675_v12  ;;  %6460 = vst [vmem:[#allocation8_spill] sm:$0xff] %v5709_v30  ;;  %v5723_v39 = vsub.f32 %v98_v57, %v1872_v34  ;;  %v5725_v46 = vpack.c.bf16 %v1926_v55, %v1923_v26  ;;  %v6310_v52 = vand.u32 4294901760, %v5690_v49  ;;  %v118_v57 = vld [vmem:[%s6201_s1 + $0x2c8] sm:$0xff] }
  0xca   :  { %4243 = vmatprep.subr.bf16.mxu1 %v6419_v9  ;;  %v2105_v9 = vsub.f32 %v5646_v62, %v6296_v6  ;;  %v1973_v61 = vand.u32 4294901760, %v1972_v20  ;;  %v1980_v45 = vand.u32 4294901760, %v1979_v28  ;;  %v5730_v15 = vsub.f32 %v115_v8, %v1923_v26 }
  0xcb   :  { %6461 = vst [vmem:[#allocation9_spill] sm:$0xff] %v5725_v46  ;;  %v1875_v10 = vand.u32 4294901760, %v99_v13  ;;  %v5739_v34 = vsub.f32 %v116_v7, %v1926_v55  ;;  %v1993_v8 = vsub.f32 %v5677_v4, %v6295_v27  ;;  %v2099_v24 = vand.u32 4294901760, %v2098_v58 }
  0xcc   :  { %4221 = vmatpush3.bf16.msra.mxu0 %v5605_v32  ;;  %v117_v32 = vld [vmem:[%s6201_s1 + $0x2c0] sm:$0xff]  ;;  %v2106_v26 = vand.u32 4294901760, %v2105_v9  ;;  %v6300_v20 = vand.u32 4294901760, %v5693_v33  ;;  %v6299_v28 = vand.u32 4294901760, %v5702_v50  ;;  %v1932_v55 = vand.u32 4294901760, %v118_v57 }
  0xcd   :  { %4245 = vmatpush3.bf16.msra.mxu1 %v6420_v1  ;;  %4223 = vmatprep.subr.bf16.mxu0 %v5611_v56  ;;  %v1878_v1 = vand.u32 4294901760, %v100_v29  ;;  %v1986_v56 = vsub.f32 %v5675_v12, %v6294_v18  ;;  %v1929_v7 = vand.u32 4294901760, %v117_v32  ;;  %v101_v18 = vld [vmem:[%s6201_s1 + $0x240] sm:$0xff]  ;;  %v1955_v27 = vsub.f32 %v5690_v49, %v6310_v52 }
  0xce   :  { %4247 = vmatprep.subr.bf16.mxu1 %v6421_v63  ;;  %v5750_v63 = vpack.c.bf16 %v2092_v2, %v2085_v38  ;;  %v5760_v58 = vpack.c.bf16 %v1980_v45, %v1973_v61  ;;  %v5762_v9 = vsub.f32 %v99_v13, %v1875_v10  ;;  %v6304_v38 = vand.u32 4294901760, %v5723_v39  ;;  %v119_v45 = vld [vmem:[%s6201_s1 + $0x2d0] sm:$0xff] }
  0xcf   :  { %v5767_v2 = vpack.c.bf16 %v1878_v1, %v1875_v10  ;;  %v5769_v6 = vsub.f32 %v100_v29, %v1878_v1  ;;  %v1987_v48 = vand.u32 4294901760, %v1986_v56  ;;  %v1994_v11 = vand.u32 4294901760, %v1993_v8  ;;  %v120_v10 = vld [vmem:[%s6201_s1 + $0x2d8] sm:$0xff] }
  0xd0   :  { %4225 = vmatpush3.bf16.msra.mxu0 %v5628_v22  ;;  %v6301_v22 = vand.u32 4294901760, %v5711_v25  ;;  %v2112_v13 = vsub.f32 %v5693_v33, %v6300_v20  ;;  %v1881_v61 = vand.u32 4294901760, %v101_v18  ;;  %v5783_v29 = vpack.c.bf16 %v1932_v55, %v1929_v7 }
  0xd1   :  { %4249 = vmatpush3.bf16.msra.mxu1 %v5273_v51  ;;  %4227 = vmatprep.subr.bf16.mxu0 %v5636_v16  ;;  %6462 = vst [vmem:[#allocation10_spill] sm:$0xff] %v5767_v2  ;;  %v102_v51 = vld [vmem:[%s6201_s1 + $0x248] sm:$0xff]  ;;  %v5774_v16 = vpack.c.bf16 %v2106_v26, %v2099_v24  ;;  %v6306_v1 = vand.u32 4294901760, %v5730_v15  ;;  %v6307_v56 = vand.u32 4294901760, %v5739_v34  ;;  %v1956_v8 = vand.u32 4294901760, %v1955_v27 }
  0xd2   :  { %4251 = vmatprep.subr.bf16.mxu1 %v6424_v43  ;;  %v2119_v43 = vsub.f32 %v5702_v50, %v6299_v28  ;;  %6463 = vst [vmem:[#allocation12_spill] sm:$0xff] %v5783_v29  ;;  %v1884_v24 = vand.u32 4294901760, %v102_v51  ;;  %v2000_v26 = vsub.f32 %v5711_v25, %v6301_v22  ;;  %v2007_v28 = vsub.f32 %v5723_v39, %v6304_v38 }
  0xd3   :  { %v5804_v20 = vpack.c.bf16 %v1994_v11, %v1987_v48  ;;  %v5806_v27 = vsub.f32 %v118_v57, %v1932_v55  ;;  %v2113_v22 = vand.u32 4294901760, %v2112_v13  ;;  %v1935_v37 = vand.u32 4294901760, %v119_v45 }
  0xd4   :  { %4229 = vmatpush3.bf16.msra.mxu0 %v5642_v53  ;;  %v5795_v53 = vsub.f32 %v117_v32, %v1929_v7  ;;  %v6308_v32 = vand.u32 4294901760, %v5762_v9  ;;  %v6309_v7 = vand.u32 4294901760, %v5769_v6  ;;  %v2120_v60 = vand.u32 4294901760, %v2119_v43 }
  0xd5   :  { %4253 = vmatpush3.bf16.msra.mxu1 %v5301_v17  ;;  %4263 = vmatprep.subr.bf16.mxu0 %v5648_v54  ;;  %v103_v17 = vld [vmem:[%s6201_s1 + $0x250] sm:$0xff]  ;;  %v1938_v38 = vand.u32 4294901760, %v120_v10  ;;  %v5818_v11 = vsub.f32 %v101_v18, %v1881_v61  ;;  %v2126_v48 = vsub.f32 %v5730_v15, %v6306_v1  ;;  %v2133_v57 = vsub.f32 %v5739_v34, %v6307_v56 }
  0xd6   :  { %4255 = vmatprep.subr.bf16.mxu1 %v5346_v5  ;;  %v104_v5 = vld [vmem:[%s6201_s1 + $0x258] sm:$0xff]  ;;  %v5828_v55 = vpack.c.bf16 %v1884_v24, %v1881_v61  ;;  %v2001_v13 = vand.u32 4294901760, %v2000_v26  ;;  %v2008_v43 = vand.u32 4294901760, %v2007_v28  ;;  %v1887_v3 = vand.u32 4294901760, %v103_v17  ;;  %v122_v28 = vld [vmem:[%s6201_s1 + $0x2e8] sm:$0xff] }
  0xd7   :  { %1747 = vmatmul.mubr.f32.vlgmr.msra.gmra.mrb[10].mxu0 %v5376_v42  ;;  %v1890_v18 = vand.u32 4294901760, %v104_v5  ;;  %v2014_v1 = vsub.f32 %v5762_v9, %v6308_v32  ;;  %v6315_v61 = vand.u32 4294901760, %v5795_v53  ;;  %v5846_v26 = vsub.f32 %v102_v51, %v1884_v24  ;;  %v5865_v32 = vld [vmem:[%s6201_s1 + $0x260] sm:$0xff] }
  0xd8   :  { %4265 = vmatpush3.bf16.msra.mxu0 %v5650_v35  ;;  %1957 = vmatprep.mubr.f32.mxu0 %v1956_v8  ;;  %v2021_v8 = vsub.f32 %v5769_v6, %v6309_v7  ;;  %v5848_v56 = vpack.c.bf16 %v1938_v38, %v1935_v37  ;;  %v5852_v7 = vsub.f32 %v119_v45, %v1935_v37  ;;  %v2134_v35 = vand.u32 4294901760, %v2133_v57 }
  0xd9   :  { %4257 = vmatpush3.bf16.msra.mxu1 %v5433_v19  ;;  %4267 = vmatprep.subr.bf16.mxu0 %v5662_v44  ;;  %v121_v19 = vld [vmem:[%s6201_s1 + $0x2e0] sm:$0xff]  ;;  %v5854_v52 = vsub.f32 %v120_v10, %v1938_v38  ;;  %v2127_v44 = vand.u32 4294901760, %v2126_v48  ;;  %v1944_v24 = vand.u32 4294901760, %v122_v28  ;;  %v5868_v37 = vpack.c.bf16 %v1890_v18, %v1887_v3  ;;  %v5876_v10 = vld [vmem:[%s6201_s1 + $0x268] sm:$0xff] }
  0xda   :  { %4259 = vmatprep.subr.bf16.mxu1 %v5435_v59  ;;  %v5844_v59 = vpack.c.bf16 %v2120_v60, %v2113_v22  ;;  %6464 = vst [vmem:[#allocation13_spill] sm:$0xff] %v5852_v7  ;;  %v5858_v60 = vpack.c.bf16 %v2008_v43, %v2001_v13  ;;  %v5860_v22 = vsub.f32 %v103_v17, %v1887_v3  ;;  %v1941_v51 = vand.u32 4294901760, %v121_v19  ;;  %v5893_v13 = vld [vmem:[%s6201_s1 + $0x2f8] sm:$0xff] }
  0xdb   :  { %6465 = vst [vmem:[#allocation15_spill] sm:$0xff] %v5854_v52  ;;  %v2015_v38 = vand.u32 4294901760, %v2014_v1  ;;  %v2022_v45 = vand.u32 4294901760, %v2021_v8  ;;  %v5878_v17 = vsub.f32 %v104_v5, %v1890_v18  ;;  %v6466_v48 = vand.u32 4294901760, %v5806_v27  ;;  %v5888_v1 = vld [vmem:[%s6201_s1 + $0x2f0] sm:$0xff] }
  0xdc   :  { %4269 = vmatpush3.bf16.msra.mxu0 %v5664_v41  ;;  %v4306_v5 = vpack.c.bf16 %v2134_v35, %v2127_v44  ;;  %v1893_v43 = vand.u32 4294901760, %v5865_v32  ;;  %v1896_v35 = vand.u32 4294901760, %v5876_v10  ;;  %v1947_v18 = vand.u32 4294901760, %v5888_v1 }
  0xdd   :  { %4261 = vmatpush3.bf16.msra.mxu1 %v5458_v31  ;;  %4271 = vmatprep.subr.bf16.mxu0 %v5679_v47  ;;  %v2140_v31 = vsub.f32 %v5795_v53, %v6315_v61  ;;  %v2147_v57 = vsub.f32 %v5806_v27, %v6466_v48  ;;  %v27_v48 = vld [vmem:[%s6200_s0 + $0x20] sm:$0xff]  ;;  %v5905_v61 = vpack.c.bf16 %v1944_v24, %v1941_v51  ;;  %v1950_v3 = vand.u32 4294901760, %v5893_v13 }
  0xde   :  { %4295 = vmatprep.subr.bf16.mxu1 %v5750_v63  ;;  %v5909_v63 = vsub.f32 %v122_v28, %v1944_v24  ;;  %v4308_v44 = vpack.c.bf16 %v2022_v45, %v2015_v38  ;;  %v6468_v24 = vand.u32 4294901760, %v5846_v26  ;;  %v5932_v45 = vand.u32 4294901760, %v27_v48 }
  0xdf   :  { %v2141_v8 = vand.u32 4294901760, %v2140_v31  ;;  %v2148_v28 = vand.u32 4294901760, %v2147_v57  ;;  %v6469_v31 = vand.u32 4294901760, %v5852_v7 }
  0xe0   :  { %1851 = vmatmul.mubr.f32.vlgmr.msra.gmra.mrb[10].mxu1 %v5376_v42  ;;  %4273 = vmatpush3.bf16.msra.mxu0 %v5709_v30  ;;  %v5907_v42 = vsub.f32 %v121_v19, %v1941_v51  ;;  %v5923_v19 = vld [vmem:[%s6201_s1 + $0x278] sm:$0xff]  ;;  %v2035_v38 = vsub.f32 %v5846_v26, %v6468_v24  ;;  %v6470_v30 = vand.u32 4294901760, %v5854_v52  ;;  %v5946_v24 = vsub.f32 %v5865_v32, %v1893_v43 }
  0xe1   :  { %4297 = vmatpush3.bf16.msra.mxu1 %v5760_v58  ;;  %4275 = vmatprep.subr.bf16.mxu0 %v5725_v46  ;;  %v5918_v58 = vld [vmem:[%s6201_s1 + $0x270] sm:$0xff]  ;;  %v2154_v46 = vsub.f32 %v5852_v7, %v6469_v31  ;;  %v1902_v47 = vand.u32 4294901760, %v5923_v19  ;;  %v6334_v32 = vand.u32 4294901760, %v5909_v63 }
  0xe2   :  { %4299 = vmatprep.subr.bf16.mxu1 %v5774_v16  ;;  %2193 = vmatprep.mubr.f32.mxu1 %v5659_v23  ;;  %v6467_v16 = vand.u32 4294901760, %v5818_v11  ;;  %v2161_v57 = vsub.f32 %v5854_v52, %v6470_v30  ;;  %v1899_v31 = vand.u32 4294901760, %v5918_v58  ;;  %v5955_v30 = vsub.f32 %v5888_v1, %v1947_v18 }
  0xe3   :  { %v4310_v23 = vpack.c.bf16 %v2148_v28, %v2141_v8  ;;  %v5963_v52 = vsub.f32 %v27_v48, %v5932_v45  ;;  %v2155_v7 = vand.u32 4294901760, %v2154_v46  ;;  %v6471_v1 = vand.u32 4294901760, %v5860_v22 }
  0xe4   :  { %v2028_v51 = vsub.f32 %v5818_v11, %v6467_v16  ;;  %4277 = vmatpush3.bf16.msra.mxu0 %v5767_v2  ;;  %v5949_v2 = vsub.f32 %v5876_v10, %v1896_v35  ;;  %v5958_v16 = vsub.f32 %v5893_v13, %v1950_v3  ;;  %v2036_v10 = vand.u32 4294901760, %v2035_v38 }
  0xe5   :  { %4301 = vmatpush3.bf16.msra.mxu1 %v5804_v20  ;;  %4279 = vmatprep.subr.bf16.mxu0 %v5783_v29  ;;  %v2042_v41 = vsub.f32 %v5860_v22, %v6471_v1  ;;  %v6472_v13 = vand.u32 4294901760, %v5878_v17  ;;  %v5975_v8 = vsub.f32 %v5918_v58, %v1899_v31  ;;  %v5978_v48 = vsub.f32 %v5923_v19, %v1902_v47 }
  0xe6   :  { %4303 = vmatprep.subr.bf16.mxu1 %v5844_v59  ;;  %v2029_v29 = vand.u32 4294901760, %v2028_v51  ;;  %v2162_v59 = vand.u32 4294901760, %v2161_v57  ;;  %v6473_v51 = vand.u32 4294901760, %v5907_v42  ;;  %v6336_v58 = vand.u32 4294901760, %v5958_v16 }
  0xe7   :  { %v2049_v20 = vsub.f32 %v5878_v17, %v6472_v13  ;;  %v5990_v1 = vpack.c.bf16 %v1896_v35, %v1893_v43  ;;  %v5992_v19 = vpack.c.bf16 %v1950_v3, %v1947_v18  ;;  %v6338_v13 = vand.u32 4294901760, %v5963_v52 }
  0xe8   :  { %4281 = vmatpush3.bf16.msra.mxu0 %v5828_v55  ;;  %v2168_v38 = vsub.f32 %v5907_v42, %v6473_v51  ;;  %v4314_v28 = vpack.c.bf16 %v2162_v59, %v2155_v7  ;;  %v2043_v46 = vand.u32 4294901760, %v2042_v41  ;;  %v6475_v43 = vand.u32 4294901760, %v5949_v2 }
  0xe9   :  { %4305 = vmatpush3.bf16.msra.mxu1 %v5858_v60  ;;  %4283 = vmatprep.subr.bf16.mxu0 %v5848_v56  ;;  %v2175_v60 = vsub.f32 %v5909_v63, %v6334_v32  ;;  %v2050_v51 = vand.u32 4294901760, %v2049_v20  ;;  %v6474_v32 = vand.u32 4294901760, %v5946_v24  ;;  %v6335_v18 = vand.u32 4294901760, %v5975_v8 }
  0xea   :  { %4307 = vmatprep.subr.bf16.mxu1 %v4306_v5  ;;  %v4312_v5 = vpack.c.bf16 %v2036_v10, %v2029_v29  ;;  %v2063_v3 = vsub.f32 %v5949_v2, %v6475_v43  ;;  %v6337_v35 = vand.u32 4294901760, %v5978_v48  ;;  %v2169_v29 = vand.u32 4294901760, %v2168_v38 }
  0xeb   :  { %v2056_v57 = vsub.f32 %v5946_v24, %v6474_v32  ;;  %v2176_v7 = vand.u32 4294901760, %v2175_v60  ;;  %v6476_v41 = vand.u32 4294901760, %v5955_v30  ;;  %v2189_v20 = vsub.f32 %v5958_v16, %v6336_v58 }
  0xec   :  { %4285 = vmatpush3.bf16.msra.mxu0 %v5868_v37  ;;  %v1961_v32 = vsub.f32 %v5963_v52, %v6338_v13  ;;  %v6015_v10 = vpack.c.bf16 %v1902_v47, %v1899_v31  ;;  %v4316_v59 = vpack.c.bf16 %v2050_v51, %v2043_v46  ;;  %v2064_v60 = vand.u32 4294901760, %v2063_v3 }
  0xed   :  { %4309 = vmatpush3.bf16.msra.mxu1 %v4308_v44  ;;  %4287 = vmatprep.subr.bf16.mxu0 %v5905_v61  ;;  %v2182_v44 = vsub.f32 %v5955_v30, %v6476_v41  ;;  %v2057_v38 = vand.u32 4294901760, %v2056_v57  ;;  %v2070_v43 = vsub.f32 %v5975_v8, %v6335_v18  ;;  %v2077_v41 = vsub.f32 %v5978_v48, %v6337_v35 }
  0xee   :  { %4311 = vmatprep.subr.bf16.mxu1 %v4310_v23  ;;  %v4326_v23 = vpack.c.bf16 %v5613_v0, %v5577_v21  ;;  %v4318_v47 = vpack.c.bf16 %v2176_v7, %v2169_v29  ;;  %v2190_v46 = vand.u32 4294901760, %v2189_v20  ;;  %v1962_v51 = vand.u32 4294901760, %v1961_v32  ;;  %v6478_v32 = vld [vmem:[#allocation7_spill] sm:$0xff] }
  0xef   :  { %v2183_v31 = vand.u32 4294901760, %v2182_v44  ;;  %v4320_v57 = vpack.c.bf16 %v2064_v60, %v2057_v38  ;;  %v4330_v3 = vpack.c.bf16 %v5646_v62, %v5644_v40  ;;  %v2071_v18 = vand.u32 4294901760, %v2070_v43  ;;  %v6480_v38 = vld [vmem:[#allocation16_spill] sm:$0xff]  ;;  %v6481_v60 = vld [vmem:[#allocation13_spill] sm:$0xff]  ;;  %v6482_v43 = vld [vmem:[#allocation15_spill] sm:$0xff] }
  0xf0   :  { %4289 = vmatpush3.bf16.msra.mxu0 %v5990_v1  ;;  %v2078_v58 = vand.u32 4294901760, %v2077_v41  ;;  %v4334_v7 = vpack.c.bf16 %v5702_v50, %v5693_v33  ;;  %v4336_v44 = vpack.c.bf16 %v5723_v39, %v5711_v25  ;;  %v4338_v20 = vpack.c.bf16 %v5739_v34, %v5730_v15 }
  0xf1   :  { %4313 = vmatpush3.bf16.msra.mxu1 %v4312_v5  ;;  %4291 = vmatprep.subr.bf16.mxu0 %v5992_v19  ;;  %v4328_v5 = vpack.c.bf16 %v5618_v14, %v5616_v36  ;;  %v4322_v35 = vpack.c.bf16 %v2190_v46, %v2183_v31  ;;  %v4346_v41 = vpack.c.bf16 %v6482_v43, %v6481_v60  ;;  %v6484_v46 = vld [vmem:[#allocation8_spill] sm:$0xff] }
  0xf2   :  { %4315 = vmatprep.subr.bf16.mxu1 %v4314_v28  ;;  %v4332_v28 = vpack.c.bf16 %v5677_v4, %v5675_v12  ;;  %v4324_v29 = vpack.c.bf16 %v2078_v58, %v2071_v18  ;;  %v4340_v58 = vpack.c.bf16 %v5769_v6, %v5762_v9  ;;  %v6477_v18 = vld [vmem:[#allocation6_spill] sm:$0xff]  ;;  %v4348_v31 = vpack.c.bf16 %v5878_v17, %v5860_v22 }
  0xf4   :  { %4293 = vmatpush3.bf16.msra.mxu0 %v6015_v10 }
  0xf5   :  { %4317 = vmatpush3.bf16.msra.mxu1 %v4316_v59  ;;  %4327 = vmatprep.subr.bf16.mxu0 %v4326_v23  ;;  %v6479_v59 = vand.u32 4294901760, %v5690_v49  ;;  %v4344_v23 = vpack.c.bf16 %v5846_v26, %v5818_v11 }
  0xf6   :  { %4319 = vmatprep.subr.bf16.mxu1 %v4318_v47  ;;  %v6483_v47 = vld [vmem:[#allocation17_spill] sm:$0xff] }
  0xf7   :  { %1963 = vmatmul.mubr.f32.vlgmr.msra.gmra.mrb[12].mxu0 %v1962_v51  ;;  %v6485_v51 = vld [vmem:[#allocation9_spill] sm:$0xff] }
  0xf8   :  { %4329 = vmatpush3.bf16.msra.mxu0 %v4328_v5  ;;  %2330 = vmatprep.mubr.f32.mxu0 %v5690_v49  ;;  %v4350_v49 = vpack.c.bf16 %v5909_v63, %v5907_v42 }
  0xf9   :  { %4321 = vmatpush3.bf16.msra.mxu1 %v4320_v57  ;;  %4331 = vmatprep.subr.bf16.mxu0 %v4330_v3  ;;  %v4352_v3 = vpack.c.bf16 %v5949_v2, %v5946_v24 }
  0xfa   :  { %4323 = vmatprep.subr.bf16.mxu1 %v4322_v35  ;;  %v4342_v35 = vpack.c.bf16 %v5806_v27, %v5795_v53 }
  0xfc   :  { %4333 = vmatpush3.bf16.msra.mxu0 %v4332_v28 }
  0xfd   :  { %4325 = vmatpush3.bf16.msra.mxu1 %v4324_v29  ;;  %4335 = vmatprep.subr.bf16.mxu0 %v4334_v7  ;;  %v6486_v29 = vld [vmem:[#allocation10_spill] sm:$0xff]  ;;  %v4354_v7 = vpack.c.bf16 %v5958_v16, %v5955_v30 }
  0xfe   :  { %4359 = vmatprep.subr.bf16.mxu1 %v5648_v54 }
 0x100   :  { %2195 = vmatmul.mubr.f32.vlgmr.msra.gmra.mrb[12].mxu1 %v5932_v45  ;;  %4337 = vmatpush3.bf16.msra.mxu0 %v4336_v44  ;;  %v6487_v44 = vld [vmem:[#allocation12_spill] sm:$0xff] }
 0x101   :  { %4361 = vmatpush3.bf16.msra.mxu1 %v6477_v18  ;;  %4339 = vmatprep.subr.bf16.mxu0 %v4338_v20  ;;  %v3205_v20 = vld [vmem:[%s6202_s2] ss:$0 sm:$0xff] }
 0x102   :  { %4363 = vmatprep.subr.bf16.mxu1 %v6478_v32  ;;  %2437 = vmatprep.mubr.f32.mxu1 %v6479_v59  ;;  %v6489_v59 = vand.u32 4294901760, %v5613_v0  ;;  %v6493_v0 = vand.u32 4294901760, %v5646_v62  ;;  %v6498_v62 = vand.u32 4294901760, %v5702_v50  ;;  %v6504_v50 = vand.u32 4294901760, %v5762_v9 }
 0x104   :  { %4341 = vmatpush3.bf16.msra.mxu0 %v4340_v58  ;;  %v4356_v58 = vpack.c.bf16 %v5978_v48, %v5975_v8 }
 0x105   :  { %4365 = vmatpush3.bf16.msra.mxu1 %v6480_v38  ;;  %4343 = vmatprep.subr.bf16.mxu0 %v4342_v35  ;;  %v6488_v35 = vand.u32 4294901760, %v5577_v21  ;;  %v6492_v21 = vand.u32 4294901760, %v5644_v40  ;;  %v6497_v40 = vand.u32 4294901760, %v5693_v33  ;;  %v6503_v33 = vand.u32 4294901760, %v5963_v52 }
 0x106   :  { %4367 = vmatprep.subr.bf16.mxu1 %v6483_v47 }
 0x108   :  { %4345 = vmatpush3.bf16.msra.mxu0 %v4344_v23  ;;  %v4390_v23 = vpack.c.bf16 %v6489_v59, %v6488_v35  ;;  %v4398_v35 = vpack.c.bf16 %v6498_v62, %v6497_v40 }
 0x109   :  { %4369 = vmatpush3.bf16.msra.mxu1 %v6484_v46  ;;  %4347 = vmatprep.subr.bf16.mxu0 %v4346_v41 }
 0x10a   :  { %4371 = vmatprep.subr.bf16.mxu1 %v6485_v51  ;;  %v3238_v5 = vpop.f32.mrb[0].mxu0 }
 0x10b   :  { %v3239_v57 = vpop.f32.mrb[1].mxu0 }
 0x10c   :  { %4349 = vmatpush3.bf16.msra.mxu0 %v4348_v31  ;;  %v3240_v28 = vadd.f32 %v3239_v57, %v3238_v5  ;;  %v6490_v5 = vand.u32 4294901760, %v5616_v36  ;;  %v6491_v57 = vand.u32 4294901760, %v5618_v14  ;;  %v6494_v36 = vand.u32 4294901760, %v5675_v12 }
 0x10d   :  { %4373 = vmatpush3.bf16.msra.mxu1 %v6486_v29  ;;  %4351 = vmatprep.subr.bf16.mxu0 %v4350_v49  ;;  %v6495_v14 = vand.u32 4294901760, %v5677_v4  ;;  %v6500_v12 = vand.u32 4294901760, %v5723_v39  ;;  %v6501_v4 = vand.u32 4294901760, %v5730_v15  ;;  %v6507_v15 = vand.u32 4294901760, %v5806_v27 }
 0x10e   :  { %4375 = vmatprep.subr.bf16.mxu1 %v6487_v44  ;;  %v241_v41 = vadd.f32 %v3240_v28, %v3205_v20  ;;  %v6512_v27 = vand.u32 4294901760, %v5860_v22  ;;  %v6517_v22 = vand.u32 4294901760, %v5949_v2 }
 0x10f   :  { %v4396_v20 = vpack.c.bf16 %v6495_v14, %v6494_v36 }
 0x110   :  { %4353 = vmatpush3.bf16.msra.mxu0 %v4352_v3  ;;  %v4392_v3 = vpack.c.bf16 %v6491_v57, %v6490_v5 }
 0x111   :  { %4377 = vmatpush3.bf16.msra.mxu1 %v5828_v55  ;;  %4355 = vmatprep.subr.bf16.mxu0 %v4354_v7  ;;  %v4394_v7 = vpack.c.bf16 %v6493_v0, %v6492_v21 }
 0x112   :  { %4379 = vmatprep.subr.bf16.mxu1 %v5848_v56 }
 0x113   :  { %v3273_v31 = vpop.f32.mrb[0].mxu1 }
 0x114   :  { %v3274_v49 = vpop.f32.mrb[1].mxu1  ;;  %4357 = vmatpush3.bf16.msra.mxu0 %v4356_v58  ;;  %v6496_v58 = vld [vmem:[#allocation14_spill] sm:$0xff] }
 0x115   :  { %v3275_v13 = vadd.f32 %v3274_v49, %v3273_v31  ;;  %4381 = vmatpush3.bf16.msra.mxu1 %v5868_v37  ;;  %4391 = vmatprep.subr.bf16.mxu0 %v4390_v23  ;;  %v6502_v23 = vand.u32 4294901760, %v5739_v34  ;;  %v6506_v31 = vand.u32 4294901760, %v5795_v53  ;;  %v6511_v53 = vand.u32 4294901760, %v6482_v43 }
 0x116   :  { %4383 = vmatprep.subr.bf16.mxu1 %v5905_v61 }
 0x117   :  { %v473_v28 = vadd.f32 %v3275_v13, %v241_v41  ;;  %2333 = vmatmul.mubr.f32.vlgmr.msra.gmra.mrb[14].mxu0 %v5963_v52  ;;  %v6499_v13 = vand.u32 4294901760, %v5711_v25  ;;  %v4402_v41 = vpack.c.bf16 %v6502_v23, %v6501_v4  ;;  %v6505_v25 = vand.u32 4294901760, %v5769_v6 }
 0x118   :  { %4393 = vmatpush3.bf16.msra.mxu0 %v4392_v3  ;;  %2607 = vmatprep.mubr.f32.mxu0 %v6496_v58  ;;  %v4406_v34 = vpack.c.bf16 %v6507_v15, %v6506_v31  ;;  %v6509_v52 = vand.u32 4294901760, %v5846_v26  ;;  %v6510_v6 = vand.u32 4294901760, %v6481_v60  ;;  %v6515_v26 = vand.u32 4294901760, %v5909_v63 }
 0x119   :  { %4385 = vmatpush3.bf16.msra.mxu1 %v5990_v1  ;;  %4395 = vmatprep.subr.bf16.mxu0 %v4394_v7  ;;  %v4400_v59 = vpack.c.bf16 %v6500_v12, %v6499_v13  ;;  %v4404_v39 = vpack.c.bf16 %v6505_v25, %v6504_v50  ;;  %v6521_v3 = vand.u32 4294901760, %v5978_v48  ;;  %v2720_v50 = vld [vmem:[#allocation2] sm:$0x1]  ;;  %v4499_v25 = vmov 0  }
 0x11a   :  { %4387 = vmatprep.subr.bf16.mxu1 %v5992_v19  ;;  %4468 = vset.pattern.permute.xlu0 %v4499_v25 }
 0x11b   :  { %2723 = vperm.xlu0 %4468, %v2720_v50  }
 0x11c   :  { %4397 = vmatpush3.bf16.msra.mxu0 %v4396_v20 }
 0x11d   :  { %4389 = vmatpush3.bf16.msra.mxu1 %v6015_v10  ;;  %4399 = vmatprep.subr.bf16.mxu0 %v4398_v35 }
 0x11e   :  { %4423 = vmatprep.subr.bf16.mxu1 %v5648_v54  ;;  %v6508_v54 = vand.u32 4294901760, %v5818_v11  ;;  %v6514_v11 = vand.u32 4294901760, %v5907_v42  ;;  %v6519_v42 = vand.u32 4294901760, %v5958_v16 }
 0x120   :  { %2441 = vmatmul.mubr.f32.vlgmr.msra.gmra.mrb[14].mxu1 %v6503_v33  ;;  %4401 = vmatpush3.bf16.msra.mxu0 %v4400_v59  ;;  %v4408_v9 = vpack.c.bf16 %v6509_v52, %v6508_v54  ;;  %v4497_v59 = vmov 0.0  }
 0x121   :  { %4425 = vmatpush3.bf16.msra.mxu1 %v6477_v18  ;;  %4403 = vmatprep.subr.bf16.mxu0 %v4402_v41  ;;  %v4410_v18 = vpack.c.bf16 %v6511_v53, %v6510_v6 }
 0x122   :  { %4427 = vmatprep.subr.bf16.mxu1 %v6478_v32  ;;  %2711 = vmatprep.mubr.f32.mxu1 %v6496_v58  ;;  %v6513_v32 = vand.u32 4294901760, %v5878_v17 }
 0x124   :  { %4405 = vmatpush3.bf16.msra.mxu0 %v4404_v39  ;;  %v4412_v49 = vpack.c.bf16 %v6513_v32, %v6512_v27 }
 0x125   :  { %4429 = vmatpush3.bf16.msra.mxu1 %v6480_v38  ;;  %4407 = vmatprep.subr.bf16.mxu0 %v4406_v34  ;;  %v4414_v38 = vpack.c.bf16 %v6515_v26, %v6514_v11 }
 0x126   :  { %4431 = vmatprep.subr.bf16.mxu1 %v6483_v47  ;;  %v6516_v47 = vand.u32 4294901760, %v5946_v24 }
 0x128   :  { %4409 = vmatpush3.bf16.msra.mxu0 %v4408_v9  ;;  %v4416_v17 = vpack.c.bf16 %v6517_v22, %v6516_v47  ;;  %v2719_v22 = vld [vmem:[%s6203_s3] sm:$0x1]  ;;  %s4500_s3 = smov [#allocation3]  }
 0x129   :  { %4433 = vmatpush3.bf16.msra.mxu1 %v6484_v46  ;;  %4411 = vmatprep.subr.bf16.mxu0 %v4410_v18  ;;  %v6518_v46 = vand.u32 4294901760, %v5955_v30  ;;  %s3197_s17 = sshll.u32 %s4500_s3, 4  ;;  %s3198_s17 = int_to_ptr.vmem [resolvable:$true] %s3197_s17 }
 0x12a   :  { %v3308_v60 = vpop.f32.mrb[2].mxu0  ;;  %4435 = vmatprep.subr.bf16.mxu1 %v6485_v51  ;;  %v6520_v51 = vand.u32 4294901760, %v5975_v8  ;;  %s4473_s18 = scalar_lea.vmem %s3198_s17, 16  ;;  %s4477_s19 = scalar_lea.vmem %s3198_s17, 32 }
 0x12b   :  { %v3309_v43 = vpop.f32.mrb[3].mxu0  ;;  %v4418_v63 = vpack.c.bf16 %v6519_v42, %v6518_v46  ;;  %v2732_v46 = vsel %vm2730_vm1, %v2719_v22, 0  ;;  %p4474_p0 = scmp.ne.s32.totalorder %s3198_s17, %s4473_s18  ;;  %p4478_p1 = scmp.lt.s32.totalorder %s3198_s17, %s3198_s17 }
 0x12c   :  { %v3310_v5 = vadd.f32 %v3309_v43, %v3308_v60  ;;  %4413 = vmatpush3.bf16.msra.mxu0 %v4412_v49  ;;  %v4420_v24 = vpack.c.bf16 %v6521_v3, %v6520_v51  ;;  %p4479_p2 = scmp.lt.s32.totalorder %s4477_s19, %s4473_s18 }
 0x12d   :  { %4437 = vmatpush3.bf16.msra.mxu1 %v6486_v29  ;;  %4415 = vmatprep.subr.bf16.mxu0 %v4414_v38 }
 0x12e   :  { %v611_v57 = vadd.f32 %v3310_v5, %v473_v28  ;;  %4439 = vmatprep.subr.bf16.mxu1 %v6487_v44  ;;  %p4480_p3 = por %p4479_p2, %p4478_p1 }
 0x130   :  { %4417 = vmatpush3.bf16.msra.mxu0 %v4416_v17  ;;  %p4481_p4 = pnand %p4480_p3, %p4474_p0 }
 0x131   :  { %4441 = vmatpush3.bf16.msra.mxu1 %v5828_v55  ;;  %4419 = vmatprep.subr.bf16.mxu0 %v4418_v63 }
 0x132   :  { %4443 = vmatprep.subr.bf16.mxu1 %v5848_v56 }
 0x133   :  { %v3343_v2 = vpop.f32.mrb[2].mxu1 }
 0x134   :  { %v3344_v29 = vpop.f32.mrb[3].mxu1  ;;  %4421 = vmatpush3.bf16.msra.mxu0 %v4420_v24 }
 0x135   :  { %v3345_v30 = vadd.f32 %v3344_v29, %v3343_v2  ;;  %4445 = vmatpush3.bf16.msra.mxu1 %v5868_v37  ;;  %3863 = vmatprep.subr.mxu0 %v4497_v59 }
 0x136   :  { %4447 = vmatprep.subr.bf16.mxu1 %v5905_v61 }
 0x137   :  { %v719_v16 = vadd.f32 %v3345_v30, %v611_v57  ;;  %2609 = vmatmul.mubr.f32.vlgmr.msra.gmra.mrb[16].mxu0 %v5932_v45  ;;  %v2803_v57 = vand.u32 4294901760, %v2732_v46 }
 0x138   :  { %3865 = vmatprep.mubr.msk.f32.mxu0 %vm4498_vm0, %v4497_v59 }
 0x139   :  { %4449 = vmatpush3.bf16.msra.mxu1 %v5990_v1  ;;  %v2804_v3 = vsub.f32 %v2732_v46, %v2803_v57 }
 0x13a   :  { %4451 = vmatprep.subr.bf16.mxu1 %v5992_v19 }
 0x13b   :  { %v2805_v30 = vand.u32 4294901760, %v2804_v3 }
 0x13d   :  { %4453 = vmatpush3.bf16.msra.mxu1 %v6015_v10 }
 0x13e   :  { %3848 = vmatprep.subr.mxu1 %v4497_v59 }
 0x140   :  { %2713 = vmatmul.mubr.f32.vlgmr.msra.gmra.mrb[16].mxu1 %v5932_v45 }
 0x141   :  { %3850 = vmatprep.mubr.msk.f32.mxu1 %vm4498_vm0, %v4497_v59 }
 0x14a   :  { %v3378_v56 = vpop.f32.mrb[4].mxu0 }
 0x14b   :  { %v3379_v55 = vpop.f32.mrb[5].mxu0 }
 0x14c   :  { %v3380_v8 = vadd.f32 %v3379_v55, %v3378_v56  ;;  %v2806_v55 = vsub.f32 %v2804_v3, %v2805_v30 }
 0x14e   :  { %v887_v48 = vadd.f32 %v3380_v8, %v719_v16 }
 0x153   :  { %v3413_v44 = vpop.f32.mrb[4].mxu1 }
 0x154   :  { %v3414_v21 = vpop.f32.mrb[5].mxu1 }
 0x155   :  { %v3415_v37 = vadd.f32 %v3414_v21, %v3413_v44  ;;  %v2807_v44 = vand.u32 4294901760, %v2806_v55 }
 0x157   :  { %v991_v0 = vadd.f32 %v3415_v37, %v887_v48 }
 0x16a   :  { %v3448_v61 = vpop.f32.mrb[6].mxu0 }
 0x16b   :  { %v3449_v7 = vpop.f32.mrb[7].mxu0 }
 0x16c   :  { %v3450_v28 = vadd.f32 %v3449_v7, %v3448_v61  ;;  %v2726_v7 = vlaneseq }
 0x16e   :  { %v1103_v36 = vadd.f32 %v3450_v28, %v991_v0  ;;  %v2727_v28 = vshrl.u32 %v2726_v7, 7 }
 0x173   :  { %v3483_v14 = vpop.f32.mrb[6].mxu1 }
 0x174   :  { %v3484_v1 = vpop.f32.mrb[7].mxu1 }
 0x175   :  { %v3485_v20 = vadd.f32 %v3484_v1, %v3483_v14 }
 0x177   :  { %v1335_v19 = vadd.f32 %v3485_v20, %v1103_v36  ;;  %v2728_v36 = vsub.s32 0, %v2727_v28 }
 0x18a   :  { %v3518_v58 = vpop.f32.mrb[8].mxu0 }
 0x18b   :  { %v3519_v10 = vpop.f32.mrb[9].mxu0 }
 0x18c   :  { %v3520_v40 = vadd.f32 %v3519_v10, %v3518_v58 }
 0x18e   :  { %v1473_v45 = vadd.f32 %v3520_v40, %v1335_v19 }
 0x193   :  { %v3553_v62 = vpop.f32.mrb[8].mxu1 }
 0x194   :  { %v3554_v35 = vpop.f32.mrb[9].mxu1 }
 0x195   :  { %v3555_v13 = vadd.f32 %v3554_v35, %v3553_v62 }
 0x197   :  { %v1581_v12 = vadd.f32 %v3555_v13, %v1473_v45 }
 0x19a   :  { %v2724_v14 = vpop.permute.xlu0 %2723 }
 0x19b   :  { %v2729_v1 = vrot.slane %v2724_v14, %v2728_v36 }
 0x1aa   :  { %v3588_v4 = vpop.f32.mrb[10].mxu0 }
 0x1ab   :  { %v3589_v23 = vpop.f32.mrb[11].mxu0 }
 0x1ac   :  { %v3590_v41 = vadd.f32 %v3589_v23, %v3588_v4 }
 0x1ae   :  { %v1749_v33 = vadd.f32 %v3590_v41, %v1581_v12 }
 0x1b3   :  { %v3623_v39 = vpop.f32.mrb[10].mxu1 }
 0x1b4   :  { %v3624_v31 = vpop.f32.mrb[11].mxu1 }
 0x1b5   :  { %v3625_v15 = vadd.f32 %v3624_v31, %v3623_v39 }
 0x1b7   :  { %v1853_v34 = vadd.f32 %v3625_v15, %v1749_v33 }
 0x1ca   :  { %v3658_v54 = vpop.f32.mrb[12].mxu0 }
 0x1cb   :  { %v3659_v52 = vpop.f32.mrb[13].mxu0 }
 0x1cc   :  { %v3660_v9 = vadd.f32 %v3659_v52, %v3658_v54 }
 0x1ce   :  { %v1965_v6 = vadd.f32 %v3660_v9, %v1853_v34 }
 0x1d3   :  { %v3693_v53 = vpop.f32.mrb[12].mxu1 }
 0x1d4   :  { %v3694_v18 = vpop.f32.mrb[13].mxu1 }
 0x1d5   :  { %v3695_v27 = vadd.f32 %v3694_v18, %v3693_v53 }
 0x1d7   :  { %v2197_v32 = vadd.f32 %v3695_v27, %v1965_v6 }
 0x1ea   :  { %v3728_v49 = vpop.f32.mrb[14].mxu0 }
 0x1eb   :  { %v3729_v11 = vpop.f32.mrb[15].mxu0 }
 0x1ec   :  { %v3730_v26 = vadd.f32 %v3729_v11, %v3728_v49 }
 0x1ee   :  { %v2335_v38 = vadd.f32 %v3730_v26, %v2197_v32 }
 0x1f3   :  { %v3763_v60 = vpop.f32.mrb[14].mxu1 }
 0x1f4   :  { %v3764_v43 = vpop.f32.mrb[15].mxu1 }
 0x1f5   :  { %v3765_v5 = vadd.f32 %v3764_v43, %v3763_v60 }
 0x1f7   :  { %v2443_v47 = vadd.f32 %v3765_v5, %v2335_v38 }
 0x20a   :  { %v3798_v17 = vpop.f32.mrb[16].mxu0 }
 0x20b   :  { %v3799_v42 = vpop.f32.mrb[17].mxu0 }
 0x20c   :  { %v3800_v63 = vadd.f32 %v3799_v42, %v3798_v17 }
 0x20e   :  { %v2611_v51 = vadd.f32 %v3800_v63, %v2443_v47 }
 0x213   :  { %v3833_v24 = vpop.f32.mrb[16].mxu1 }
 0x214   :  { %v3834_v2 = vpop.f32.mrb[17].mxu1 }
 0x215   :  { %v3835_v29 = vadd.f32 %v3834_v2, %v3833_v24 }
 0x217   :  { %v2715_v16 = vadd.f32 %v3835_v29, %v2611_v51 }
 0x219   :  { %v2718_v56 = vmax.f32 %v2715_v16, 0.0 }
 0x21b   :  { %v2735_v8 = vsel %vm2730_vm1, %v2718_v56, 0 }
 0x21c   :  { %v2738_v48 = vand.u32 4294901760, %v2735_v8 }
 0x21e   :  { %v2815_v21 = vsub.f32 %v2735_v8, %v2738_v48  ;;  %3849 = vmatpush3.xpose.msra.mxu1 %v2738_v48  ;;  %3864 = vmatpush3.xpose.msra.mxu0 %v2738_v48 }
 0x21f   :  { %3868 = vmatprep.subr.mxu0 %v4497_v59  ;;  %3853 = vmatprep.subr.mxu1 %v4497_v59 }
 0x220   :  { %v2816_v37 = vand.u32 4294901760, %v2815_v21 }
 0x221   :  { %3851 = vmatmul.mubr.f32.vlgmr.msra.gmra.mrb[18].mxu1 %v2807_v44  ;;  %3866 = vmatmul.mubr.f32.vlgmr.msra.gmra.mrb[18].mxu0 %v2805_v30 }
 0x222   :  { %3869 = vmatpush3.xpose.msra.mxu0 %v2816_v37  ;;  %v2817_v0 = vsub.f32 %v2815_v21, %v2816_v37  ;;  %3855 = vmatprep.mubr.msk.f32.mxu1 %vm4498_vm0, %v4497_v59 }
 0x223   :  { %3870 = vmatprep.mubr.msk.f32.mxu0 %vm4498_vm0, %v4497_v59  ;;  %3873 = vmatprep.subr.mxu0 %v4497_v59 }
 0x224   :  { %v2818_v61 = vand.u32 4294901760, %v2817_v0 }
 0x226   :  { %3854 = vmatpush3.xpose.msra.mxu1 %v2818_v61 }
 0x227   :  { %3858 = vmatprep.subr.mxu1 %v4497_v59 }
 0x229   :  { %3856 = vmatmul.mubr.f32.vlgmr.msra.gmra.mrb[18].mxu1 %v2803_v57  ;;  %3871 = vmatmul.mubr.f32.vlgmr.msra.gmra.mrb[18].mxu0 %v2803_v57 }
 0x22a   :  { %3874 = vmatpush3.xpose.msra.mxu0 %v2738_v48  ;;  %3859 = vmatpush3.xpose.msra.mxu1 %v2815_v21 }
 0x22b   :  { %3860 = vmatprep.mubr.msk.f32.mxu1 %vm4498_vm0, %v4497_v59  ;;  %3875 = vmatprep.mubr.msk.f32.mxu0 %vm4498_vm0, %v4497_v59 }
 0x231   :  { %3861 = vmatmul.mubr.f32.vlgmr.msra.gmra.mrb[18].mxu1 %v2804_v3  ;;  %3876 = vmatmul.mubr.f32.vlgmr.msra.gmra.mrb[18].mxu0 %v2803_v57 }
 0x304   :  { %v2959_v20 = vpop.f32.mrb[18].mxu1  ;;  %v3179_v19 = vpop.f32.mrb[18].mxu0 }
 0x305   :  { %v4454_v58 = vadd.f32 %v2959_v20, %v2729_v1  ;;  %v3862_v10 = vpop.f32.mrb[19].mxu1  ;;  %v3877_v40 = vpop.f32.mrb[19].mxu0 }
 0x307   :  { %v4455_v45 = vadd.f32 %v4454_v58, %v3179_v19 }
 0x309   :  { %v3183_v62 = vsub.f32 0.0, %v4455_v45 }
 0x30b   :  { %v3184_v35 = vmul.f32 1.442695, %v3183_v62 }
 0x30d   :  { %4469 = vpow2.f32 %v3184_v35 }
 0x317   :  { %v4470_v13 = vpop.eup %4469 }
 0x318   :  { %v3186_v12 = vadd.f32 1.0, %v4470_v13 }
 0x31a   :  { %4471 = vrcp.f32 %v3186_v12 }
 0x324   :  { %v4472_v59 = vpop.eup %4471 }
 0x325   :  { %3190 = vst.msk [vmem:[#allocation3] sm:$0x1] %vm3189_vm2, %v4472_v59 }
 0x326   :  { %4484 = shalt.err (!%p4481_p4)
}
 0x327   :  { %s4485_s22 = scalar_lea.hbm %s6205_s5, 16 }
 0x328   :  { %p4486_p5 = scmp.ne.s32.totalorder %s6205_s5, %s4485_s22  ;;  %p4489_p6 = scmp.lt.u32.totalorder %s4485_s22, %s6205_s5 }
 0x32a   :  { %p4491_p7 = pnand %p4489_p6, %p4486_p5 }
 0x32c   :  { %4494 = shalt.err (!%p4491_p7)
}
 0x32d   :  { %3200 = dma.vmem_to_hbm [thread:$0]  %s3198_s17, 16, %s6205_s5, [#allocation4]  }
 0x32e   :  { %4495 = dma.done.wait [#allocation4], 16  }
 0x32f   :  { %4496 = vsyncadd [#allocation4], 4294967280 }
 0x330   :  { %3204 = vsyncpa [#allocation4], 1 }

</bundles_post_ra>
